<compile_context>
chip_gen: v7x
topology: tpu7x:2x2x1
jax: 0.10.0
libtpu: 0.0.40
codegen_flags: <defaults>
</compile_context>

<pallas_src>
import jax
import jax.numpy as jnp
from jax.experimental import pallas as pl
from jax.experimental.pallas import tpu as pltpu


# ---------------------------------------------------------------------------
# Fused kernel: channel-max + 2-layer per-head matmul for a block of Dt heads.
# ---------------------------------------------------------------------------
def _sa_fused_kernel(x_ref, w1_ref, b1_ref, w2_ref, b2_ref, out_ref):
    #   x_ref  : (B, C, I)   f32   (full array, same block every grid step)
    #   w1_ref : (I, Dt*J)   bf16  (columns ordered [d, j], d-outer)
    #   b1_ref : (1, Dt*J)   f32
    #   w2_ref : (Dt, J, I)  bf16
    #   b2_ref : (Dt, 1, I)  f32
    #   out_ref: (Dt, B, I)  f32
    Dt, J, _ = w2_ref.shape

    # channel max (VPU reduction over the C axis)
    mask = jnp.max(x_ref[...], axis=1)                               # (B, I) f32

    # layer 1: one wide MXU matmul over all Dt heads, bf16 in / f32 accumulate
    h = jnp.dot(mask.astype(jnp.bfloat16), w1_ref[...],
                preferred_element_type=jnp.float32)                  # (B, Dt*J)
    h = h + b1_ref[...]                                              # f32 bias add

    # layer 2: per-head matmul, statically unrolled (Dt is small).
    # Cast h to bf16 ONCE, then take aligned lane slices inside the loop.
    h16 = h.astype(jnp.bfloat16)                                     # (B, Dt*J) bf16
    for d in range(Dt):
        h_d = h16[:, d * J:(d + 1) * J]                              # (B, J) aligned lanes
        o_d = jnp.dot(h_d, w2_ref[d], preferred_element_type=jnp.float32)  # (B, I)
        out_ref[d] = (o_d + b2_ref[d]).astype(out_ref.dtype)         # (B,I)+(1,I)


# ---------------------------------------------------------------------------
# One-time parameter prep: PyTorch layout -> kernel-friendly d-major layout.
# ---------------------------------------------------------------------------
def prepare_sa_params(w1, b1, w2, b2):
    """w1:(I,J,D) b1:(1,J,D) w2:(J,I,D) b2:(1,I,D)  (PyTorch module layout)."""
    I, J, D = w1.shape
    w1_wide = jnp.transpose(w1, (0, 2, 1)).reshape(I, D * J).astype(jnp.bfloat16)
    b1_wide = jnp.transpose(b1, (0, 2, 1)).reshape(1, D * J).astype(jnp.float32)
    w2_dm = jnp.transpose(w2, (2, 0, 1)).astype(jnp.bfloat16)        # (D, J, I)
    b2_dm = jnp.transpose(b2, (2, 0, 1)).astype(jnp.float32)         # (D, 1, I)
    # TODO(synk): optional int8 weight path (w1/w2 int8 + per-head scale) for
    # v5e/v6e to halve the weight DMA; v7x's MXU has no int8 so keep bf16 there.
    return w1_wide, b1_wide, w2_dm, b2_dm


# ---------------------------------------------------------------------------
# Generation detection: how many TensorCores share this chip's grid?
# ---------------------------------------------------------------------------
def _num_tensorcores_per_chip():
    try:
        kind = jax.devices()[0].device_kind.lower()
    except Exception:
        return 1
    # v7x has 2 TensorCores per chip; v5e/v6e (and earlier) drive 1 per Pallas grid.
    if "v7" in kind or "7x" in kind:
        return 2
    return 1


# ---------------------------------------------------------------------------
# Forward wrapper.
# ---------------------------------------------------------------------------
def sa_forward(x_bchw, params, out_layout="bid"):
    """out_layout="bid": PyTorch-layout (B, I, D) output (relayout fuses under jit).
    out_layout="dbi": lane-dense (D, B, I) slab straight from the kernel."""
    w1_wide, b1_wide, w2_dm, b2_dm = params
    B, C, H, W = x_bchw.shape
    I = H * W
    D, J, _ = w2_dm.shape

    # Generation-aware head split: only split when the chip actually has 2 TCs
    # (v7x) AND the split keeps the wide-w1 column block lane-aligned.
    n_tc = _num_tensorcores_per_chip()
    if n_tc >= 2 and D % 2 == 0 and ((D // 2) * J) % 128 == 0:
        Dt = D // 2
    else:
        Dt = D
    nd = D // Dt

    x = x_bchw.reshape(B, C, I)

    itemsize = jnp.dtype(jnp.float32).itemsize
    bf16_size = jnp.dtype(jnp.bfloat16).itemsize
    cost = pl.CostEstimate(
        flops=4 * B * I * J * D,                                  # two matmuls
        transcendentals=0,
        bytes_accessed=(x.size * itemsize
                        + w1_wide.size * bf16_size + b1_wide.size * itemsize
                        + w2_dm.size * bf16_size + b2_dm.size * itemsize
                        + D * B * I * itemsize),
    )

    out_dbi = pl.pallas_call(
        _sa_fused_kernel,
        out_shape=jax.ShapeDtypeStruct((D, B, I), jnp.float32),
        grid_spec=pltpu.PrefetchScalarGridSpec(
            num_scalar_prefetch=0,
            grid=(nd,),
            in_specs=[
                pl.BlockSpec((B, C, I), lambda d: (0, 0, 0)),        # x (full)
                pl.BlockSpec((I, Dt * J), lambda d: (0, d)),         # w1 wide block
                pl.BlockSpec((1, Dt * J), lambda d: (0, d)),         # b1 wide block
                pl.BlockSpec((Dt, J, I), lambda d: (d, 0, 0)),       # w2[d-block]
                pl.BlockSpec((Dt, 1, I), lambda d: (d, 0, 0)),       # b2[d-block]
            ],
            out_specs=pl.BlockSpec((Dt, B, I), lambda d: (d, 0, 0)),  # lane-dense
        ),
        compiler_params=pltpu.CompilerParams(
            dimension_semantics=("parallel",)),
        cost_estimate=cost,
    )(x, w1_wide, b1_wide, w2_dm, b2_dm)

    if out_layout == "dbi":
        return out_dbi
    # PyTorch output layout (B, I, D). Tiny permute; fuses when called under jit.
    return jnp.transpose(out_dbi, (1, 2, 0))


# ---------------------------------------------------------------------------
# Parameter init (mirrors nn.init.normal_(std=0.005) / constant 0.1, PyTorch layout)
# ---------------------------------------------------------------------------
def init_sa_params(key, in_dim, num):
    hid_dim = in_dim // 2
    k1, k2 = jax.random.split(key)
    w1 = 0.005 * jax.random.normal(k1, (in_dim, hid_dim, num), jnp.float32)
    b1 = jnp.full((1, hid_dim, num), 0.1, jnp.float32)
    w2 = 0.005 * jax.random.normal(k2, (hid_dim, in_dim, num), jnp.float32)
    b2 = jnp.full((1, in_dim, num), 0.1, jnp.float32)
    return w1, b1, w2, b2


if __name__ == "__main__":
    B, C, H, W = 2, 4, 16, 16
    num = 8
    in_dim = H * W                                    # 256 (J = 128, D = 8)
    key = jax.random.PRNGKey(0)
    kx, kp = jax.random.split(key)
    x = jax.random.normal(kx, (B, C, H, W), jnp.float32)
    w1, b1, w2, b2 = init_sa_params(kp, in_dim, num)  # PyTorch layout

    params = prepare_sa_params(w1, b1, w2, b2)

    # jit the whole forward so the (D,B,I)->(B,I,D) relayout stays inside the
    # same program (no standalone dispatched transpose op).
    fwd = jax.jit(sa_forward)
    out = jax.block_until_ready(fwd(x, params))                  # (B, I, D)
    assert out.shape == (B, in_dim, num), out.shape

    # Reference 1: numerics matched to the kernel (bf16 MXU inputs, f32 accum).
    mask_ref = x.max(axis=1).reshape(B, in_dim)
    h_ref = jnp.einsum('bi,ijd->bjd', mask_ref.astype(jnp.bfloat16),
                       w1.astype(jnp.bfloat16),
                       preferred_element_type=jnp.float32) + b1
    ref_bf16 = jnp.einsum('bjd,jid->bid', h_ref.astype(jnp.bfloat16),
                          w2.astype(jnp.bfloat16),
                          preferred_element_type=jnp.float32) + b2

    # Reference 2: pure f32 (same einsums as the PyTorch forward), loose check.
    h32 = jnp.einsum('bi,ijd->bjd', mask_ref, w1) + b1
    ref_f32 = jnp.einsum('bjd,jid->bid', h32, w2) + b2

    assert jnp.allclose(out, ref_bf16, atol=1e-3, rtol=1e-2), \
        float(jnp.max(jnp.abs(out - ref_bf16)))
    assert jnp.allclose(out, ref_f32, atol=2e-2, rtol=1e-1), \
        float(jnp.max(jnp.abs(out - ref_f32)))
    print("KERNEL_OK")
</pallas_src>

<mosaic_0001>
module attributes {stable_mosaic.version = 11 : i64} {
  func.func @_sa_fused_kernel(%arg0: i32, %arg1: memref<2x4x256xf32, #tpu.memory_space<vmem>>, %arg2: memref<256x1024xbf16, #tpu.memory_space<vmem>>, %arg3: memref<1x1024xf32, #tpu.memory_space<vmem>>, %arg4: memref<8x128x256xbf16, #tpu.memory_space<vmem>>, %arg5: memref<8x1x256xf32, #tpu.memory_space<vmem>>, %arg6: memref<8x2x256xf32, #tpu.memory_space<vmem>>) attributes {dimension_semantics = [#tpu.dimension_semantics<parallel>], iteration_bounds = array<i64: 1>, scalar_prefetch = 0 : i64, scratch_operands = 0 : i64, tpu.core_type = #tpu.core_type<tc>, window_params = [{pipeline_mode = #tpu.pipeline_mode<synchronous>, transform_indices = @transform_0, window_bounds = array<i64: 2, 4, 256>}, {transform_indices = @transform_1, window_bounds = array<i64: 256, 1024>}, {transform_indices = @transform_2, window_bounds = array<i64: 1, 1024>}, {transform_indices = @transform_3, window_bounds = array<i64: 8, 128, 256>}, {transform_indices = @transform_4, window_bounds = array<i64: 8, 1, 256>}, {transform_indices = @transform_5, window_bounds = array<i64: 8, 2, 256>}]} {
    %c0 = arith.constant 0 : index
    %c0_0 = arith.constant 0 : index
    %c0_1 = arith.constant 0 : index
    %0 = vector.load %arg1[%c0, %c0_0, %c0_1] : memref<2x4x256xf32, #tpu.memory_space<vmem>>, vector<2x4x256xf32>
    %cst = arith.constant dense<0xFF800000> : vector<2x256xf32>
    %1 = vector.multi_reduction <maximumf>, %0, %cst [1] : vector<2x4x256xf32> to vector<2x256xf32>
    %2 = arith.truncf %1 : vector<2x256xf32> to vector<2x256xbf16>
    %c0_2 = arith.constant 0 : index
    %c0_3 = arith.constant 0 : index
    %3 = vector.load %arg2[%c0_2, %c0_3] : memref<256x1024xbf16, #tpu.memory_space<vmem>>, vector<256x1024xbf16>
    %cst_4 = arith.constant dense<0.000000e+00> : vector<2x1024xf32>
    %4 = tpu.matmul %2, %3, %cst_4 {dimension_numbers = #tpu.dot_dimension_numbers<[1], [0], [0], [1], [0, 0, 1, 1], [], []>} : vector<2x256xbf16>, vector<256x1024xbf16>, vector<2x1024xf32> -> vector<2x1024xf32>
    %c0_5 = arith.constant 0 : index
    %c0_6 = arith.constant 0 : index
    %5 = vector.load %arg3[%c0_5, %c0_6] : memref<1x1024xf32, #tpu.memory_space<vmem>>, vector<1x1024xf32>
    %6 = vector.broadcast %5 : vector<1x1024xf32> to vector<2x1024xf32>
    %7 = arith.addf %4, %6 : vector<2x1024xf32>
    %8 = arith.truncf %7 : vector<2x1024xf32> to vector<2x1024xbf16>
    %9 = vector.extract_strided_slice %8 {offsets = [0, 0], sizes = [2, 128], strides = [1, 1]} : vector<2x1024xbf16> to vector<2x128xbf16>
    %c0_7 = arith.constant 0 : index
    %c0_8 = arith.constant 0 : index
    %c0_9 = arith.constant 0 : index
    %10 = vector.load %arg4[%c0_7, %c0_8, %c0_9] : memref<8x128x256xbf16, #tpu.memory_space<vmem>>, vector<1x128x256xbf16>
    %11 = vector.shape_cast %10 : vector<1x128x256xbf16> to vector<128x256xbf16>
    %cst_10 = arith.constant dense<0.000000e+00> : vector<2x256xf32>
    %12 = tpu.matmul %9, %11, %cst_10 {dimension_numbers = #tpu.dot_dimension_numbers<[1], [0], [0], [1], [0, 0, 1, 1], [], []>} : vector<2x128xbf16>, vector<128x256xbf16>, vector<2x256xf32> -> vector<2x256xf32>
    %c0_11 = arith.constant 0 : index
    %c0_12 = arith.constant 0 : index
    %c0_13 = arith.constant 0 : index
    %13 = vector.load %arg5[%c0_11, %c0_12, %c0_13] : memref<8x1x256xf32, #tpu.memory_space<vmem>>, vector<1x1x256xf32>
    %14 = vector.shape_cast %13 : vector<1x1x256xf32> to vector<1x256xf32>
    %15 = vector.broadcast %14 : vector<1x256xf32> to vector<2x256xf32>
    %16 = arith.addf %12, %15 : vector<2x256xf32>
    %c0_14 = arith.constant 0 : index
    %c0_15 = arith.constant 0 : index
    %c0_16 = arith.constant 0 : index
    %17 = vector.load %arg6[%c0_14, %c0_15, %c0_16] : memref<8x2x256xf32, #tpu.memory_space<vmem>>, vector<1x2x256xf32>
    %18 = vector.shape_cast %17 : vector<1x2x256xf32> to vector<2x256xf32>
    %19 = vector.shape_cast %16 : vector<2x256xf32> to vector<1x2x256xf32>
    tpu.vector_store %arg6[%c0_14, %c0_15, %c0_16], %19 {strides = array<i32>} : memref<8x2x256xf32, #tpu.memory_space<vmem>>, vector<1x2x256xf32>,
    %20 = vector.extract_strided_slice %8 {offsets = [0, 128], sizes = [2, 128], strides = [1, 1]} : vector<2x1024xbf16> to vector<2x128xbf16>
    %c1 = arith.constant 1 : index
    %c0_17 = arith.constant 0 : index
    %c0_18 = arith.constant 0 : index
    %21 = vector.load %arg4[%c1, %c0_17, %c0_18] : memref<8x128x256xbf16, #tpu.memory_space<vmem>>, vector<1x128x256xbf16>
    %22 = vector.shape_cast %21 : vector<1x128x256xbf16> to vector<128x256xbf16>
    %cst_19 = arith.constant dense<0.000000e+00> : vector<2x256xf32>
    %23 = tpu.matmul %20, %22, %cst_19 {dimension_numbers = #tpu.dot_dimension_numbers<[1], [0], [0], [1], [0, 0, 1, 1], [], []>} : vector<2x128xbf16>, vector<128x256xbf16>, vector<2x256xf32> -> vector<2x256xf32>
    %c1_20 = arith.constant 1 : index
    %c0_21 = arith.constant 0 : index
    %c0_22 = arith.constant 0 : index
    %24 = vector.load %arg5[%c1_20, %c0_21, %c0_22] : memref<8x1x256xf32, #tpu.memory_space<vmem>>, vector<1x1x256xf32>
    %25 = vector.shape_cast %24 : vector<1x1x256xf32> to vector<1x256xf32>
    %26 = vector.broadcast %25 : vector<1x256xf32> to vector<2x256xf32>
    %27 = arith.addf %23, %26 : vector<2x256xf32>
    %c1_23 = arith.constant 1 : index
    %c0_24 = arith.constant 0 : index
    %c0_25 = arith.constant 0 : index
    %28 = vector.load %arg6[%c1_23, %c0_24, %c0_25] : memref<8x2x256xf32, #tpu.memory_space<vmem>>, vector<1x2x256xf32>
    %29 = vector.shape_cast %28 : vector<1x2x256xf32> to vector<2x256xf32>
    %30 = vector.shape_cast %27 : vector<2x256xf32> to vector<1x2x256xf32>
    tpu.vector_store %arg6[%c1_23, %c0_24, %c0_25], %30 {strides = array<i32>} : memref<8x2x256xf32, #tpu.memory_space<vmem>>, vector<1x2x256xf32>,
    %31 = vector.extract_strided_slice %8 {offsets = [0, 256], sizes = [2, 128], strides = [1, 1]} : vector<2x1024xbf16> to vector<2x128xbf16>
    %c2 = arith.constant 2 : index
    %c0_26 = arith.constant 0 : index
    %c0_27 = arith.constant 0 : index
    %32 = vector.load %arg4[%c2, %c0_26, %c0_27] : memref<8x128x256xbf16, #tpu.memory_space<vmem>>, vector<1x128x256xbf16>
    %33 = vector.shape_cast %32 : vector<1x128x256xbf16> to vector<128x256xbf16>
    %cst_28 = arith.constant dense<0.000000e+00> : vector<2x256xf32>
    %34 = tpu.matmul %31, %33, %cst_28 {dimension_numbers = #tpu.dot_dimension_numbers<[1], [0], [0], [1], [0, 0, 1, 1], [], []>} : vector<2x128xbf16>, vector<128x256xbf16>, vector<2x256xf32> -> vector<2x256xf32>
    %c2_29 = arith.constant 2 : index
    %c0_30 = arith.constant 0 : index
    %c0_31 = arith.constant 0 : index
    %35 = vector.load %arg5[%c2_29, %c0_30, %c0_31] : memref<8x1x256xf32, #tpu.memory_space<vmem>>, vector<1x1x256xf32>
    %36 = vector.shape_cast %35 : vector<1x1x256xf32> to vector<1x256xf32>
    %37 = vector.broadcast %36 : vector<1x256xf32> to vector<2x256xf32>
    %38 = arith.addf %34, %37 : vector<2x256xf32>
    %c2_32 = arith.constant 2 : index
    %c0_33 = arith.constant 0 : index
    %c0_34 = arith.constant 0 : index
    %39 = vector.load %arg6[%c2_32, %c0_33, %c0_34] : memref<8x2x256xf32, #tpu.memory_space<vmem>>, vector<1x2x256xf32>
    %40 = vector.shape_cast %39 : vector<1x2x256xf32> to vector<2x256xf32>
    %41 = vector.shape_cast %38 : vector<2x256xf32> to vector<1x2x256xf32>
    tpu.vector_store %arg6[%c2_32, %c0_33, %c0_34], %41 {strides = array<i32>} : memref<8x2x256xf32, #tpu.memory_space<vmem>>, vector<1x2x256xf32>,
    %42 = vector.extract_strided_slice %8 {offsets = [0, 384], sizes = [2, 128], strides = [1, 1]} : vector<2x1024xbf16> to vector<2x128xbf16>
    %c3 = arith.constant 3 : index
    %c0_35 = arith.constant 0 : index
    %c0_36 = arith.constant 0 : index
    %43 = vector.load %arg4[%c3, %c0_35, %c0_36] : memref<8x128x256xbf16, #tpu.memory_space<vmem>>, vector<1x128x256xbf16>
    %44 = vector.shape_cast %43 : vector<1x128x256xbf16> to vector<128x256xbf16>
    %cst_37 = arith.constant dense<0.000000e+00> : vector<2x256xf32>
    %45 = tpu.matmul %42, %44, %cst_37 {dimension_numbers = #tpu.dot_dimension_numbers<[1], [0], [0], [1], [0, 0, 1, 1], [], []>} : vector<2x128xbf16>, vector<128x256xbf16>, vector<2x256xf32> -> vector<2x256xf32>
    %c3_38 = arith.constant 3 : index
    %c0_39 = arith.constant 0 : index
    %c0_40 = arith.constant 0 : index
    %46 = vector.load %arg5[%c3_38, %c0_39, %c0_40] : memref<8x1x256xf32, #tpu.memory_space<vmem>>, vector<1x1x256xf32>
    %47 = vector.shape_cast %46 : vector<1x1x256xf32> to vector<1x256xf32>
    %48 = vector.broadcast %47 : vector<1x256xf32> to vector<2x256xf32>
    %49 = arith.addf %45, %48 : vector<2x256xf32>
    %c3_41 = arith.constant 3 : index
    %c0_42 = arith.constant 0 : index
    %c0_43 = arith.constant 0 : index
    %50 = vector.load %arg6[%c3_41, %c0_42, %c0_43] : memref<8x2x256xf32, #tpu.memory_space<vmem>>, vector<1x2x256xf32>
    %51 = vector.shape_cast %50 : vector<1x2x256xf32> to vector<2x256xf32>
    %52 = vector.shape_cast %49 : vector<2x256xf32> to vector<1x2x256xf32>
    tpu.vector_store %arg6[%c3_41, %c0_42, %c0_43], %52 {strides = array<i32>} : memref<8x2x256xf32, #tpu.memory_space<vmem>>, vector<1x2x256xf32>,
    %53 = vector.extract_strided_slice %8 {offsets = [0, 512], sizes = [2, 128], strides = [1, 1]} : vector<2x1024xbf16> to vector<2x128xbf16>
    %c4 = arith.constant 4 : index
    %c0_44 = arith.constant 0 : index
    %c0_45 = arith.constant 0 : index
    %54 = vector.load %arg4[%c4, %c0_44, %c0_45] : memref<8x128x256xbf16, #tpu.memory_space<vmem>>, vector<1x128x256xbf16>
    %55 = vector.shape_cast %54 : vector<1x128x256xbf16> to vector<128x256xbf16>
    %cst_46 = arith.constant dense<0.000000e+00> : vector<2x256xf32>
    %56 = tpu.matmul %53, %55, %cst_46 {dimension_numbers = #tpu.dot_dimension_numbers<[1], [0], [0], [1], [0, 0, 1, 1], [], []>} : vector<2x128xbf16>, vector<128x256xbf16>, vector<2x256xf32> -> vector<2x256xf32>
    %c4_47 = arith.constant 4 : index
    %c0_48 = arith.constant 0 : index
    %c0_49 = arith.constant 0 : index
    %57 = vector.load %arg5[%c4_47, %c0_48, %c0_49] : memref<8x1x256xf32, #tpu.memory_space<vmem>>, vector<1x1x256xf32>
    %58 = vector.shape_cast %57 : vector<1x1x256xf32> to vector<1x256xf32>
    %59 = vector.broadcast %58 : vector<1x256xf32> to vector<2x256xf32>
    %60 = arith.addf %56, %59 : vector<2x256xf32>
    %c4_50 = arith.constant 4 : index
    %c0_51 = arith.constant 0 : index
    %c0_52 = arith.constant 0 : index
    %61 = vector.load %arg6[%c4_50, %c0_51, %c0_52] : memref<8x2x256xf32, #tpu.memory_space<vmem>>, vector<1x2x256xf32>
    %62 = vector.shape_cast %61 : vector<1x2x256xf32> to vector<2x256xf32>
    %63 = vector.shape_cast %60 : vector<2x256xf32> to vector<1x2x256xf32>
    tpu.vector_store %arg6[%c4_50, %c0_51, %c0_52], %63 {strides = array<i32>} : memref<8x2x256xf32, #tpu.memory_space<vmem>>, vector<1x2x256xf32>,
    %64 = vector.extract_strided_slice %8 {offsets = [0, 640], sizes = [2, 128], strides = [1, 1]} : vector<2x1024xbf16> to vector<2x128xbf16>
    %c5 = arith.constant 5 : index
    %c0_53 = arith.constant 0 : index
    %c0_54 = arith.constant 0 : index
    %65 = vector.load %arg4[%c5, %c0_53, %c0_54] : memref<8x128x256xbf16, #tpu.memory_space<vmem>>, vector<1x128x256xbf16>
    %66 = vector.shape_cast %65 : vector<1x128x256xbf16> to vector<128x256xbf16>
    %cst_55 = arith.constant dense<0.000000e+00> : vector<2x256xf32>
    %67 = tpu.matmul %64, %66, %cst_55 {dimension_numbers = #tpu.dot_dimension_numbers<[1], [0], [0], [1], [0, 0, 1, 1], [], []>} : vector<2x128xbf16>, vector<128x256xbf16>, vector<2x256xf32> -> vector<2x256xf32>
    %c5_56 = arith.constant 5 : index
    %c0_57 = arith.constant 0 : index
    %c0_58 = arith.constant 0 : index
    %68 = vector.load %arg5[%c5_56, %c0_57, %c0_58] : memref<8x1x256xf32, #tpu.memory_space<vmem>>, vector<1x1x256xf32>
    %69 = vector.shape_cast %68 : vector<1x1x256xf32> to vector<1x256xf32>
    %70 = vector.broadcast %69 : vector<1x256xf32> to vector<2x256xf32>
    %71 = arith.addf %67, %70 : vector<2x256xf32>
    %c5_59 = arith.constant 5 : index
    %c0_60 = arith.constant 0 : index
    %c0_61 = arith.constant 0 : index
    %72 = vector.load %arg6[%c5_59, %c0_60, %c0_61] : memref<8x2x256xf32, #tpu.memory_space<vmem>>, vector<1x2x256xf32>
    %73 = vector.shape_cast %72 : vector<1x2x256xf32> to vector<2x256xf32>
    %74 = vector.shape_cast %71 : vector<2x256xf32> to vector<1x2x256xf32>
    tpu.vector_store %arg6[%c5_59, %c0_60, %c0_61], %74 {strides = array<i32>} : memref<8x2x256xf32, #tpu.memory_space<vmem>>, vector<1x2x256xf32>,
    %75 = vector.extract_strided_slice %8 {offsets = [0, 768], sizes = [2, 128], strides = [1, 1]} : vector<2x1024xbf16> to vector<2x128xbf16>
    %c6 = arith.constant 6 : index
    %c0_62 = arith.constant 0 : index
    %c0_63 = arith.constant 0 : index
    %76 = vector.load %arg4[%c6, %c0_62, %c0_63] : memref<8x128x256xbf16, #tpu.memory_space<vmem>>, vector<1x128x256xbf16>
    %77 = vector.shape_cast %76 : vector<1x128x256xbf16> to vector<128x256xbf16>
    %cst_64 = arith.constant dense<0.000000e+00> : vector<2x256xf32>
    %78 = tpu.matmul %75, %77, %cst_64 {dimension_numbers = #tpu.dot_dimension_numbers<[1], [0], [0], [1], [0, 0, 1, 1], [], []>} : vector<2x128xbf16>, vector<128x256xbf16>, vector<2x256xf32> -> vector<2x256xf32>
    %c6_65 = arith.constant 6 : index
    %c0_66 = arith.constant 0 : index
    %c0_67 = arith.constant 0 : index
    %79 = vector.load %arg5[%c6_65, %c0_66, %c0_67] : memref<8x1x256xf32, #tpu.memory_space<vmem>>, vector<1x1x256xf32>
    %80 = vector.shape_cast %79 : vector<1x1x256xf32> to vector<1x256xf32>
    %81 = vector.broadcast %80 : vector<1x256xf32> to vector<2x256xf32>
    %82 = arith.addf %78, %81 : vector<2x256xf32>
    %c6_68 = arith.constant 6 : index
    %c0_69 = arith.constant 0 : index
    %c0_70 = arith.constant 0 : index
    %83 = vector.load %arg6[%c6_68, %c0_69, %c0_70] : memref<8x2x256xf32, #tpu.memory_space<vmem>>, vector<1x2x256xf32>
    %84 = vector.shape_cast %83 : vector<1x2x256xf32> to vector<2x256xf32>
    %85 = vector.shape_cast %82 : vector<2x256xf32> to vector<1x2x256xf32>
    tpu.vector_store %arg6[%c6_68, %c0_69, %c0_70], %85 {strides = array<i32>} : memref<8x2x256xf32, #tpu.memory_space<vmem>>, vector<1x2x256xf32>,
    %86 = vector.extract_strided_slice %8 {offsets = [0, 896], sizes = [2, 128], strides = [1, 1]} : vector<2x1024xbf16> to vector<2x128xbf16>
    %c7 = arith.constant 7 : index
    %c0_71 = arith.constant 0 : index
    %c0_72 = arith.constant 0 : index
    %87 = vector.load %arg4[%c7, %c0_71, %c0_72] : memref<8x128x256xbf16, #tpu.memory_space<vmem>>, vector<1x128x256xbf16>
    %88 = vector.shape_cast %87 : vector<1x128x256xbf16> to vector<128x256xbf16>
    %cst_73 = arith.constant dense<0.000000e+00> : vector<2x256xf32>
    %89 = tpu.matmul %86, %88, %cst_73 {dimension_numbers = #tpu.dot_dimension_numbers<[1], [0], [0], [1], [0, 0, 1, 1], [], []>} : vector<2x128xbf16>, vector<128x256xbf16>, vector<2x256xf32> -> vector<2x256xf32>
    %c7_74 = arith.constant 7 : index
    %c0_75 = arith.constant 0 : index
    %c0_76 = arith.constant 0 : index
    %90 = vector.load %arg5[%c7_74, %c0_75, %c0_76] : memref<8x1x256xf32, #tpu.memory_space<vmem>>, vector<1x1x256xf32>
    %91 = vector.shape_cast %90 : vector<1x1x256xf32> to vector<1x256xf32>
    %92 = vector.broadcast %91 : vector<1x256xf32> to vector<2x256xf32>
    %93 = arith.addf %89, %92 : vector<2x256xf32>
    %c7_77 = arith.constant 7 : index
    %c0_78 = arith.constant 0 : index
    %c0_79 = arith.constant 0 : index
    %94 = vector.load %arg6[%c7_77, %c0_78, %c0_79] : memref<8x2x256xf32, #tpu.memory_space<vmem>>, vector<1x2x256xf32>
    %95 = vector.shape_cast %94 : vector<1x2x256xf32> to vector<2x256xf32>
    %96 = vector.shape_cast %93 : vector<2x256xf32> to vector<1x2x256xf32>
    tpu.vector_store %arg6[%c7_77, %c0_78, %c0_79], %96 {strides = array<i32>} : memref<8x2x256xf32, #tpu.memory_space<vmem>>, vector<1x2x256xf32>,
    return
  }
  func.func @transform_0(%arg0: i32) -> (i32, i32, i32) {
    %c0_i32 = arith.constant 0 : i32
    %c0_i32_0 = arith.constant 0 : i32
    %c0_i32_1 = arith.constant 0 : i32
    %c0_i32_2 = arith.constant 0 : i32
    return %c0_i32, %c0_i32_0, %c0_i32_1 : i32, i32, i32
  }
  func.func @transform_1(%arg0: i32) -> (i32, i32) {
    %c0_i32 = arith.constant 0 : i32
    %c0_i32_0 = arith.constant 0 : i32
    return %c0_i32, %arg0 : i32, i32
  }
  func.func @transform_2(%arg0: i32) -> (i32, i32) {
    %c0_i32 = arith.constant 0 : i32
    %c0_i32_0 = arith.constant 0 : i32
    return %c0_i32, %arg0 : i32, i32
  }
  func.func @transform_3(%arg0: i32) -> (i32, i32, i32) {
    %c0_i32 = arith.constant 0 : i32
    %c0_i32_0 = arith.constant 0 : i32
    %c0_i32_1 = arith.constant 0 : i32
    return %arg0, %c0_i32, %c0_i32_0 : i32, i32, i32
  }
  func.func @transform_4(%arg0: i32) -> (i32, i32, i32) {
    %c0_i32 = arith.constant 0 : i32
    %c0_i32_0 = arith.constant 0 : i32
    %c0_i32_1 = arith.constant 0 : i32
    return %arg0, %c0_i32, %c0_i32_0 : i32, i32, i32
  }
  func.func @transform_5(%arg0: i32) -> (i32, i32, i32) {
    %c0_i32 = arith.constant 0 : i32
    %c0_i32_0 = arith.constant 0 : i32
    %c0_i32_1 = arith.constant 0 : i32
    return %arg0, %c0_i32, %c0_i32_0 : i32, i32, i32
  }
}

</mosaic_0001>

<bundles_post_ra>
// kernel: sa_forward.1
= control target key start
LH: loop header
LB: loop body
LE: loop exit
PB: predicated region body
PF: predicated region fallthrough
CT: control target
= control target key end

     0   :  { %10 = vsyncpa [#allocation3], 0  ;;  %s3115_s0 = inlined_call_operand.vmem [shape: f32[2,4,256], index: 0, kind: input, shape index: {}]   ;;  %s3116_s1 = inlined_call_operand.hbm [shape: bf16[256,1024], index: 1, kind: input, shape index: {}]   ;;  %s3117_s2 = inlined_call_operand.vmem [shape: f32[1,1024], index: 2, kind: input, shape index: {}]   ;;  %s3118_s3 = inlined_call_operand.hbm [shape: bf16[8,128,256], index: 3, kind: input, shape index: {}]   ;;  %s3119_s4 = inlined_call_operand.vmem [shape: f32[8,1,256], index: 4, kind: input, shape index: {}]   ;;  %s3120_s5 = inlined_call_operand.vmem [shape: f32[8,2,256], index: 5, kind: output, shape index: {}]  }
   0x1   :  { %11 = vsyncpa [#allocation5], 0  ;;  %s2929_s18 = smov [#allocation2]   ;;  %s2881_s22 = scalar_lea.hbm %s3116_s1, 16384 }
   0x2   :  { %s19_s19 = sshll.u32 %s2929_s18, 4  ;;  %p2882_p0 = scmp.ne.s32.totalorder %s3116_s1, %s2881_s22  ;;  %s20_s19 = int_to_ptr.vmem [resolvable:$true] %s19_s19 }
   0x3   :  { %p2885_p1 = scmp.lt.u32.totalorder %s2881_s22, %s3116_s1 }
   0x5   :  { %p2887_p2 = pnand %p2885_p1, %p2882_p0 }
   0x7   :  { %2890 = shalt.err (!%p2887_p2)
}
   0x8   :  { %s2891_s27 = scalar_lea.vmem %s20_s19, 16384  ;;  %p2896_p4 = scmp.lt.s32.totalorder %s20_s19, %s20_s19 }
   0x9   :  { %p2892_p3 = scmp.ne.s32.totalorder %s20_s19, %s2891_s27  ;;  %p2897_p5 = scmp.lt.s32.totalorder %s2891_s27, %s2891_s27 }
   0xb   :  { %p2898_p6 = por %p2897_p5, %p2896_p4 }
   0xd   :  { %p2899_p7 = pnand %p2898_p6, %p2892_p3 }
   0xf   :  { %2902 = shalt.err (!%p2899_p7)
}
  0x10   :  { %s2930_s28 = smov 512   ;;  %s2931_s29 = smov 32  }
  0x11   :  { %25 = dma.hbm_to_vmem [thread:$0]  %s3116_s1, 16384, %s20_s19, [#allocation3], %s2930_s28, %s2930_s28, %s2931_s29  }
  0x12   :  { %s2932_s7 = smov [#allocation4]   ;;  %s2903_s11 = scalar_lea.hbm %s3118_s3, 16384 }
  0x13   :  { %s33_s8 = sshll.u32 %s2932_s7, 4  ;;  %p2904_p8 = scmp.ne.s32.totalorder %s3118_s3, %s2903_s11  ;;  %s34_s8 = int_to_ptr.vmem [resolvable:$true] %s33_s8 }
  0x14   :  { %p2907_p9 = scmp.lt.u32.totalorder %s2903_s11, %s3118_s3 }
  0x16   :  { %p2909_p10 = pnand %p2907_p9, %p2904_p8 }
  0x18   :  { %2912 = shalt.err (!%p2909_p10)
}
  0x19   :  { %s2913_s16 = scalar_lea.vmem %s34_s8, 16384  ;;  %p2918_p12 = scmp.lt.s32.totalorder %s34_s8, %s34_s8 }
  0x1a   :  { %p2914_p11 = scmp.ne.s32.totalorder %s34_s8, %s2913_s16  ;;  %p2919_p13 = scmp.lt.s32.totalorder %s2913_s16, %s2913_s16 }
  0x1c   :  { %p2920_p0 = por %p2919_p13, %p2918_p12 }
  0x1e   :  { %p2921_p1 = pnand %p2920_p0, %p2914_p11 }
  0x20   :  { %2924 = shalt.err (!%p2921_p1)
}
  0x21   :  { %s2933_s1 = smov 128   ;;  %s2934_s17 = smov 8  }
  0x22   :  { %39 = dma.hbm_to_vmem [thread:$0]  %s3118_s3, 16384, %s34_s8, [#allocation5], %s2933_s1, %s2933_s1, %s2934_s17  }
  0x23   :  { %2925 = dma.done.wait [#allocation3], 16384  }
  0x24   :  { %2926 = vsyncadd [#allocation3], 4294950912 }
  0x25   :  { %2927 = dma.done.wait [#allocation5], 16384  }
  0x26   :  { %2928 = vsyncadd [#allocation5], 4294950912  ;;  %v90_v0 = vld [vmem:[#allocation2] sm:$0xff]  ;;  %v91_v11 = vld [vmem:[#allocation2 + $0x8] sm:$0xff]  ;;  %vm57_vm0 = vcmask 1043456   ;;  %vm268_vm1 = vcmask 1041409  }
  0x27   :  { %v94_v1 = vld [vmem:[#allocation2 + $0x20] sm:$0xff]  ;;  %v95_v12 = vld [vmem:[#allocation2 + $0x28] sm:$0xff] }
  0x28   :  { %v98_v2 = vld [vmem:[#allocation2 + $0x40] sm:$0xff]  ;;  %v2403_v3 = vcombine.high %v90_v0, %v94_v1  ;;  %v2402_v4 = vcombine.low %v90_v0, %v94_v1  ;;  %v2405_v15 = vcombine.high %v91_v11, %v95_v12  ;;  %v2404_v16 = vcombine.low %v91_v11, %v95_v12  ;;  %v99_v17 = vld [vmem:[#allocation2 + $0x48] sm:$0xff] }
  0x29   :  { %v102_v5 = vld [vmem:[#allocation2 + $0x60] sm:$0xff]  ;;  %v103_v18 = vld [vmem:[#allocation2 + $0x68] sm:$0xff] }
  0x2a   :  { %v2411_v6 = vcombine.high %v98_v2, %v102_v5  ;;  %v106_v7 = vld [vmem:[#allocation2 + $0x80] sm:$0xff]  ;;  %915 = vmatprep.subr.bf16.mxu0 %v2403_v3  ;;  %v2410_v9 = vcombine.low %v98_v2, %v102_v5  ;;  %956 = vmatprep.subr.bf16.mxu1 %v2405_v15  ;;  %v2413_v20 = vcombine.high %v99_v17, %v103_v18  ;;  %v107_v21 = vld [vmem:[#allocation2 + $0x88] sm:$0xff] }
  0x2b   :  { %v110_v8 = vld [vmem:[#allocation2 + $0xa0] sm:$0xff]  ;;  %916 = vmatpush1.bf16.msra.mxu0 %v2402_v4  ;;  %v111_v22 = vld [vmem:[#allocation2 + $0xa8] sm:$0xff]  ;;  %957 = vmatpush1.bf16.msra.mxu1 %v2404_v16  ;;  %v2412_v24 = vcombine.low %v99_v17, %v103_v18 }
  0x2c   :  { %917 = vmatprep.subr.bf16.mxu0 %v2411_v6  ;;  %v2419_v10 = vcombine.high %v106_v7, %v110_v8  ;;  %v114_v13 = vld [vmem:[#allocation2 + $0xc0] sm:$0xff]  ;;  %v2418_v19 = vcombine.low %v106_v7, %v110_v8  ;;  %958 = vmatprep.subr.bf16.mxu1 %v2413_v20  ;;  %v2421_v27 = vcombine.high %v107_v21, %v111_v22  ;;  %v115_v28 = vld [vmem:[#allocation2 + $0xc8] sm:$0xff] }
  0x2d   :  { %v118_v14 = vld [vmem:[#allocation2 + $0xe0] sm:$0xff]  ;;  %v119_v29 = vld [vmem:[#allocation2 + $0xe8] sm:$0xff]  ;;  %v2420_v32 = vcombine.low %v107_v21, %v111_v22 }
  0x2e   :  { %v2427_v23 = vcombine.high %v114_v13, %v118_v14  ;;  %v122_v25 = vld [vmem:[#allocation2 + $0x100] sm:$0xff]  ;;  %v2426_v30 = vcombine.low %v114_v13, %v118_v14  ;;  %v2429_v35 = vcombine.high %v115_v28, %v119_v29  ;;  %v123_v36 = vld [vmem:[#allocation2 + $0x108] sm:$0xff]  ;;  %v2428_v41 = vcombine.low %v115_v28, %v119_v29 }
  0x2f   :  { %918 = vmatpush1.bf16.msra.mxu0 %v2410_v9  ;;  %v126_v26 = vld [vmem:[#allocation2 + $0x120] sm:$0xff]  ;;  %959 = vmatpush1.bf16.msra.mxu1 %v2412_v24  ;;  %v127_v37 = vld [vmem:[#allocation2 + $0x128] sm:$0xff] }
  0x30   :  { %919 = vmatprep.subr.bf16.mxu0 %v2419_v10  ;;  %v2435_v31 = vcombine.high %v122_v25, %v126_v26  ;;  %v130_v33 = vld [vmem:[#allocation2 + $0x140] sm:$0xff]  ;;  %960 = vmatprep.subr.bf16.mxu1 %v2421_v27  ;;  %v2434_v38 = vcombine.low %v122_v25, %v126_v26  ;;  %v50_v42 = vld [vmem:[%s3115_s0 + $0x8] sm:$0xff]  ;;  %v2437_v46 = vcombine.high %v123_v36, %v127_v37 }
  0x31   :  { %v134_v34 = vld [vmem:[#allocation2 + $0x160] sm:$0xff]  ;;  %v54_v47 = vcombine.high %v50_v42, %v50_v42  ;;  %v131_v48 = vld [vmem:[#allocation2 + $0x148] sm:$0xff]  ;;  %v2436_v57 = vcombine.low %v123_v36, %v127_v37  ;;  %v72_v6 = vsel %vm57_vm0, %v50_v42, -inf }
  0x32   :  { %v49_v39 = vld [vmem:[%s3115_s0] sm:$0xff]  ;;  %v2443_v40 = vcombine.high %v130_v33, %v134_v34  ;;  %v135_v49 = vld [vmem:[#allocation2 + $0x168] sm:$0xff]  ;;  %v2442_v51 = vcombine.low %v130_v33, %v134_v34  ;;  %v73_v17 = vrot.slane %v72_v6, 4 }
  0x33   :  { %920 = vmatpush1.bf16.msra.mxu0 %v2418_v19  ;;  %961 = vmatpush1.bf16.msra.mxu1 %v2420_v32  ;;  %v53_v43 = vcombine.high %v49_v39, %v49_v39  ;;  %v138_v44 = vld [vmem:[#allocation2 + $0x180] sm:$0xff]  ;;  %v79_v53 = vsel %vm57_vm0, %v54_v47, -inf  ;;  %v2445_v59 = vcombine.high %v131_v48, %v135_v49  ;;  %v139_v61 = vld [vmem:[#allocation2 + $0x188] sm:$0xff]  ;;  %v2444_v3 = vcombine.low %v131_v48, %v135_v49 }
  0x34   :  { %921 = vmatprep.subr.bf16.mxu0 %v2427_v23  ;;  %v142_v45 = vld [vmem:[#allocation2 + $0x1a0] sm:$0xff]  ;;  %962 = vmatprep.subr.bf16.mxu1 %v2429_v35  ;;  %v80_v58 = vrot.slane %v79_v53, 4  ;;  %v143_v62 = vld [vmem:[#allocation2 + $0x1a8] sm:$0xff]  ;;  %v58_v5 = vsel %vm57_vm0, %v49_v39, -inf }
  0x35   :  { %v65_v50 = vsel %vm57_vm0, %v53_v43, -inf  ;;  %v2451_v54 = vcombine.high %v138_v44, %v142_v45  ;;  %v146_v55 = vld [vmem:[#allocation2 + $0x1c0] sm:$0xff]  ;;  %v2450_v0 = vcombine.low %v138_v44, %v142_v45  ;;  %v2453_v9 = vcombine.high %v139_v61, %v143_v62  ;;  %v147_v11 = vld [vmem:[#allocation2 + $0x1c8] sm:$0xff] }
  0x36   :  { %v66_v52 = vrot.slane %v65_v50, 4  ;;  %v150_v56 = vld [vmem:[#allocation2 + $0x1e0] sm:$0xff]  ;;  %v81_v63 = vmax.f32 %v79_v53, %v80_v58  ;;  %v151_v12 = vld [vmem:[#allocation2 + $0x1e8] sm:$0xff]  ;;  %v59_v16 = vrot.slane %v58_v5, 4  ;;  %v2452_v19 = vcombine.low %v139_v61, %v143_v62 }
  0x37   :  { %922 = vmatpush1.bf16.msra.mxu0 %v2426_v30  ;;  %963 = vmatpush1.bf16.msra.mxu1 %v2428_v41  ;;  %v2459_v1 = vcombine.high %v146_v55, %v150_v56  ;;  %v154_v7 = vld [vmem:[#allocation2 + $0x200] sm:$0xff]  ;;  %v2458_v14 = vcombine.low %v146_v55, %v150_v56  ;;  %v2461_v23 = vcombine.high %v147_v11, %v151_v12  ;;  %v155_v25 = vld [vmem:[#allocation2 + $0x208] sm:$0xff] }
  0x38   :  { %923 = vmatprep.subr.bf16.mxu0 %v2435_v31  ;;  %964 = vmatprep.subr.bf16.mxu1 %v2437_v46  ;;  %v67_v60 = vmax.f32 %v65_v50, %v66_v52  ;;  %v82_v4 = vrot.slane %v81_v63, 2  ;;  %v158_v8 = vld [vmem:[#allocation2 + $0x220] sm:$0xff]  ;;  %v159_v26 = vld [vmem:[#allocation2 + $0x228] sm:$0xff]  ;;  %v60_v30 = vmax.f32 %v58_v5, %v59_v16  ;;  %v74_v31 = vmax.f32 %v72_v6, %v73_v17 }
  0x39   :  { %v2467_v18 = vcombine.high %v154_v7, %v158_v8  ;;  %v162_v21 = vld [vmem:[#allocation2 + $0x240] sm:$0xff]  ;;  %v2466_v28 = vcombine.low %v154_v7, %v158_v8  ;;  %v2460_v33 = vcombine.low %v147_v11, %v151_v12  ;;  %v2469_v37 = vcombine.high %v155_v25, %v159_v26  ;;  %v167_v41 = vld [vmem:[#allocation2 + $0x268] sm:$0xff] }
  0x3a   :  { %v68_v2 = vrot.slane %v67_v60, 2  ;;  %v83_v13 = vmax.f32 %v81_v63, %v82_v4  ;;  %v166_v22 = vld [vmem:[#allocation2 + $0x260] sm:$0xff]  ;;  %v61_v43 = vrot.slane %v60_v30, 2  ;;  %v75_v44 = vrot.slane %v74_v31, 2  ;;  %v171_v52 = vld [vmem:[#allocation2 + $0x288] sm:$0xff] }
  0x3b   :  { %924 = vmatpush1.bf16.msra.mxu0 %v2434_v38  ;;  %965 = vmatpush1.bf16.msra.mxu1 %v2436_v57  ;;  %v2475_v32 = vcombine.high %v162_v21, %v166_v22  ;;  %v170_v35 = vld [vmem:[#allocation2 + $0x280] sm:$0xff]  ;;  %v2474_v42 = vcombine.low %v162_v21, %v166_v22  ;;  %v2468_v46 = vcombine.low %v155_v25, %v159_v26  ;;  %v175_v53 = vld [vmem:[#allocation2 + $0x2a8] sm:$0xff] }
  0x3c   :  { %925 = vmatprep.subr.bf16.mxu0 %v2443_v40  ;;  %966 = vmatprep.subr.bf16.mxu1 %v2445_v59  ;;  %v69_v10 = vmax.f32 %v67_v60, %v68_v2  ;;  %v84_v20 = vrot.slane %v83_v13, 1  ;;  %v174_v36 = vld [vmem:[#allocation2 + $0x2a0] sm:$0xff]  ;;  %v163_v40 = vld [vmem:[#allocation2 + $0x248] sm:$0xff]  ;;  %v62_v55 = vmax.f32 %v60_v30, %v61_v43  ;;  %v76_v56 = vmax.f32 %v74_v31, %v75_v44  ;;  %v104_v44 = vld [vmem:[#allocation2 + $0x70] sm:$0xff] }
  0x3d   :  { %v2483_v45 = vcombine.high %v170_v35, %v174_v36  ;;  %v178_v48 = vld [vmem:[#allocation2 + $0x2c0] sm:$0xff]  ;;  %v2476_v58 = vcombine.low %v163_v40, %v167_v41  ;;  %v2485_v61 = vcombine.high %v171_v52, %v175_v53  ;;  %v179_v62 = vld [vmem:[#allocation2 + $0x2c8] sm:$0xff]  ;;  %v2484_v6 = vcombine.low %v171_v52, %v175_v53  ;;  %v108_v52 = vld [vmem:[#allocation2 + $0x90] sm:$0xff] }
  0x3e   :  { %v70_v15 = vrot.slane %v69_v10, 1  ;;  %v85_v27 = vmax.f32 %v83_v13, %v84_v20  ;;  %v182_v49 = vld [vmem:[#allocation2 + $0x2e0] sm:$0xff]  ;;  %v183_v63 = vld [vmem:[#allocation2 + $0x2e8] sm:$0xff]  ;;  %v77_v2 = vrot.slane %v76_v56, 1  ;;  %v112_v53 = vld [vmem:[#allocation2 + $0xb0] sm:$0xff] }
  0x3f   :  { %926 = vmatpush1.bf16.msra.mxu0 %v2442_v51  ;;  %967 = vmatpush1.bf16.msra.mxu1 %v2444_v3  ;;  %v2477_v51 = vcombine.high %v163_v40, %v167_v41  ;;  %v2491_v57 = vcombine.high %v178_v48, %v182_v49  ;;  %v186_v59 = vld [vmem:[#allocation2 + $0x300] sm:$0xff]  ;;  %v2493_v7 = vcombine.high %v179_v62, %v183_v63  ;;  %v187_v8 = vld [vmem:[#allocation2 + $0x308] sm:$0xff] }
  0x40   :  { %927 = vmatprep.subr.bf16.mxu0 %v2451_v54  ;;  %968 = vmatprep.subr.bf16.mxu1 %v2453_v9  ;;  %v71_v24 = vmax.f32 %v69_v10, %v70_v15  ;;  %v89_v34 = vpack.c.bf16 %v85_v27, %v85_v27  ;;  %v2482_v54 = vcombine.low %v170_v35, %v174_v36  ;;  %v190_v60 = vld [vmem:[#allocation2 + $0x320] sm:$0xff]  ;;  %v191_v9 = vld [vmem:[#allocation2 + $0x328] sm:$0xff]  ;;  %v96_v35 = vld [vmem:[#allocation2 + $0x30] sm:$0xff] }
  0x41   :  { %v2499_v3 = vcombine.high %v186_v59, %v190_v60  ;;  %v194_v4 = vld [vmem:[#allocation2 + $0x340] sm:$0xff]  ;;  %v2498_v10 = vcombine.low %v186_v59, %v190_v60  ;;  %v78_v12 = vmax.f32 %v76_v56, %v77_v2  ;;  %v2492_v16 = vcombine.low %v179_v62, %v183_v63  ;;  %v101_v56 = vld [vmem:[#allocation2 + $0x58] sm:$0xff]  ;;  %v116_v60 = vld [vmem:[#allocation2 + $0xd0] sm:$0xff] }
  0x42   :  { %v87_v29 = vpack.c.bf16 %v71_v24, %v71_v24  ;;  %v267_v39 = vunpack.c.l.b16 %v89_v34  ;;  %v198_v5 = vld [vmem:[#allocation2 + $0x360] sm:$0xff]  ;;  %v2501_v17 = vcombine.high %v187_v8, %v191_v9  ;;  %v2500_v26 = vcombine.low %v187_v8, %v191_v9  ;;  %v92_v34 = vld [vmem:[#allocation2 + $0x10] sm:$0xff]  ;;  %v117_v8 = vld [vmem:[#allocation2 + $0xd8] sm:$0xff] }
  0x43   :  { %928 = vmatpush1.bf16.msra.mxu0 %v2450_v0  ;;  %969 = vmatpush1.bf16.msra.mxu1 %v2452_v19  ;;  %v2490_v0 = vcombine.low %v178_v48, %v182_v49  ;;  %v2507_v13 = vcombine.high %v194_v4, %v198_v5  ;;  %v206_v15 = vld [vmem:[#allocation2 + $0x3a0] sm:$0xff]  ;;  %v199_v19 = vld [vmem:[#allocation2 + $0x368] sm:$0xff]  ;;  %v2506_v20 = vcombine.low %v194_v4, %v198_v5  ;;  %v97_v48 = vld [vmem:[#allocation2 + $0x38] sm:$0xff] }
  0x44   :  { %929 = vmatprep.subr.bf16.mxu0 %v2459_v1  ;;  %970 = vmatprep.subr.bf16.mxu1 %v2461_v23  ;;  %v265_v38 = vunpack.c.l.b16 %v87_v29  ;;  %v63_v1 = vrot.slane %v62_v55, 1  ;;  %v88_v22 = vpack.c.bf16 %v78_v12, %v78_v12  ;;  %v210_v24 = vld [vmem:[#allocation2 + $0x3c0] sm:$0xff]  ;;  %v207_v29 = vld [vmem:[#allocation2 + $0x3a8] sm:$0xff]  ;;  %v2407_v43 = vcombine.high %v92_v34, %v96_v35  ;;  %v124_v4 = vld [vmem:[#allocation2 + $0x110] sm:$0xff] }
  0x45   :  { %v214_v25 = vld [vmem:[#allocation2 + $0x3e0] sm:$0xff]  ;;  %v2423_v62 = vcombine.high %v108_v52, %v112_v53  ;;  %v128_v5 = vld [vmem:[#allocation2 + $0x130] sm:$0xff]  ;;  %v121_v9 = vld [vmem:[#allocation2 + $0xf8] sm:$0xff] }
  0x46   :  { %v270_v47 = vsel %vm268_vm1, %v267_v39, %v265_v38  ;;  %v64_v11 = vmax.f32 %v62_v55, %v63_v1  ;;  %v211_v38 = vld [vmem:[#allocation2 + $0x3c8] sm:$0xff]  ;;  %v2522_v40 = vcombine.low %v210_v24, %v214_v25  ;;  %v113_v1 = vld [vmem:[#allocation2 + $0xb8] sm:$0xff]  ;;  %v132_v12 = vld [vmem:[#allocation2 + $0x150] sm:$0xff] }
  0x47   :  { %930 = vmatpush1.bf16.msra.mxu0 %v2458_v14  ;;  %971 = vmatpush1.bf16.msra.mxu1 %v2460_v33  ;;  %v3001_v50 = vpack.c.b16 %v270_v47, %v270_v47  ;;  %v202_v14 = vld [vmem:[#allocation2 + $0x380] sm:$0xff]  ;;  %v2523_v33 = vcombine.high %v210_v24, %v214_v25  ;;  %v215_v39 = vld [vmem:[#allocation2 + $0x3e8] sm:$0xff]  ;;  %v137_v24 = vld [vmem:[#allocation2 + $0x178] sm:$0xff] }
  0x48   :  { %931 = vmatprep.subr.bf16.mxu0 %v2467_v18  ;;  %972 = vmatprep.subr.bf16.mxu1 %v2469_v37  ;;  %v195_v18 = vld [vmem:[#allocation2 + $0x348] sm:$0xff]  ;;  %v86_v21 = vpack.c.bf16 %v64_v11, %v64_v11  ;;  %v2515_v23 = vcombine.high %v202_v14, %v206_v15  ;;  %v2514_v30 = vcombine.low %v202_v14, %v206_v15 }
  0x49   :  { %947 = vmatprep.mubr.bf16.mxu0 %v3001_v50  ;;  %988 = vmatprep.mubr.bf16.mxu1 %v3001_v50  ;;  %v2509_v27 = vcombine.high %v195_v18, %v199_v19  ;;  %v2508_v36 = vcombine.low %v195_v18, %v199_v19  ;;  %v2525_v47 = vcombine.high %v211_v38, %v215_v39 }
  0x4a   :  { %v264_v31 = vunpack.c.l.b16 %v86_v21  ;;  %v2524_v55 = vcombine.low %v211_v38, %v215_v39  ;;  %v2439_v14 = vcombine.high %v124_v4, %v128_v5  ;;  %v2433_v18 = vcombine.high %v117_v8, %v121_v9  ;;  %v144_v21 = vld [vmem:[#allocation2 + $0x1b0] sm:$0xff]  ;;  %v149_v39 = vld [vmem:[#allocation2 + $0x1d8] sm:$0xff] }
  0x4b   :  { %932 = vmatpush1.bf16.msra.mxu0 %v2466_v28  ;;  %973 = vmatpush1.bf16.msra.mxu1 %v2468_v46  ;;  %v203_v28 = vld [vmem:[#allocation2 + $0x388] sm:$0xff]  ;;  %v93_v46 = vld [vmem:[#allocation2 + $0x18] sm:$0xff]  ;;  %v2438_v19 = vcombine.low %v124_v4, %v128_v5 }
  0x4c   :  { %933 = vmatprep.subr.bf16.mxu0 %v2475_v32  ;;  %974 = vmatprep.subr.bf16.mxu1 %v2477_v51  ;;  %v266_v32 = vunpack.c.l.b16 %v88_v22  ;;  %v2517_v37 = vcombine.high %v203_v28, %v207_v29  ;;  %v2406_v51 = vcombine.low %v92_v34, %v96_v35  ;;  %v2408_v63 = vcombine.low %v93_v46, %v97_v48  ;;  %v156_v35 = vld [vmem:[#allocation2 + $0x210] sm:$0xff] }
  0x4e   :  { %v269_v41 = vsel %vm268_vm1, %v266_v32, %v264_v31  ;;  %v141_v31 = vld [vmem:[#allocation2 + $0x198] sm:$0xff] }
  0x4f   :  { %934 = vmatpush1.bf16.msra.mxu0 %v2474_v42  ;;  %975 = vmatpush1.bf16.msra.mxu1 %v2476_v58  ;;  %v100_v42 = vld [vmem:[#allocation2 + $0x50] sm:$0xff]  ;;  %v3006_v49 = vpack.c.b16 %v269_v41, %v269_v41  ;;  %v2409_v58 = vcombine.high %v93_v46, %v97_v48  ;;  %v145_v32 = vld [vmem:[#allocation2 + $0x1b8] sm:$0xff] }
  0x50   :  { %935 = vmatprep.subr.bf16.mxu0 %v2483_v45  ;;  %976 = vmatprep.subr.bf16.mxu1 %v2485_v61  ;;  %v2516_v45 = vcombine.low %v203_v28, %v207_v29  ;;  %v2414_v59 = vcombine.low %v100_v42, %v104_v44  ;;  %v120_v61 = vld [vmem:[#allocation2 + $0xf0] sm:$0xff]  ;;  %v2457_v41 = vcombine.high %v141_v31, %v145_v32 }
  0x51   :  { %v2430_v11 = vcombine.low %v116_v60, %v120_v61  ;;  %v152_v28 = vld [vmem:[#allocation2 + $0x1f0] sm:$0xff]  ;;  %v2456_v46 = vcombine.low %v141_v31, %v145_v32 }
  0x52   :  { %v216_v31 = vld [vmem:[#allocation2 + $0x3f0] sm:$0xff] }
  0x53   :  { %936 = vmatpush1.bf16.msra.mxu0 %v2482_v54  ;;  %977 = vmatpush1.bf16.msra.mxu1 %v2484_v6  ;;  %v2415_v54 = vcombine.high %v100_v42, %v104_v44  ;;  %v2431_v6 = vcombine.high %v116_v60, %v120_v61  ;;  %v168_v44 = vld [vmem:[#allocation2 + $0x270] sm:$0xff] }
  0x54   :  { %937 = vmatprep.subr.bf16.mxu0 %v2491_v57  ;;  %978 = vmatprep.subr.bf16.mxu1 %v2493_v7  ;;  %v105_v57 = vld [vmem:[#allocation2 + $0x78] sm:$0xff] }
  0x55   :  { %v2417_v2 = vcombine.high %v101_v56, %v105_v57  ;;  %v2416_v7 = vcombine.low %v101_v56, %v105_v57  ;;  %v176_v56 = vld [vmem:[#allocation2 + $0x2b0] sm:$0xff] }
  0x57   :  { %938 = vmatpush1.bf16.msra.mxu0 %v2490_v0  ;;  %979 = vmatpush1.bf16.msra.mxu1 %v2492_v16  ;;  %v109_v0 = vld [vmem:[#allocation2 + $0x98] sm:$0xff] }
  0x58   :  { %939 = vmatprep.subr.bf16.mxu0 %v2499_v3  ;;  %980 = vmatprep.subr.bf16.mxu1 %v2501_v17  ;;  %v2422_v3 = vcombine.low %v108_v52, %v112_v53  ;;  %v2424_v15 = vcombine.low %v109_v0, %v113_v1  ;;  %v125_v16 = vld [vmem:[#allocation2 + $0x118] sm:$0xff] }
  0x59   :  { %v129_v17 = vld [vmem:[#allocation2 + $0x138] sm:$0xff] }
  0x5a   :  { %v2441_v25 = vcombine.high %v125_v16, %v129_v17 }
  0x5b   :  { %940 = vmatpush1.bf16.msra.mxu0 %v2498_v10  ;;  %981 = vmatpush1.bf16.msra.mxu1 %v2500_v26  ;;  %v2425_v10 = vcombine.high %v109_v0, %v113_v1  ;;  %v184_v0 = vld [vmem:[#allocation2 + $0x2f0] sm:$0xff] }
  0x5c   :  { %941 = vmatprep.subr.bf16.mxu0 %v2507_v13  ;;  %982 = vmatprep.subr.bf16.mxu1 %v2509_v27  ;;  %v136_v13 = vld [vmem:[#allocation2 + $0x170] sm:$0xff] }
  0x5d   :  { %v2447_v22 = vcombine.high %v132_v12, %v136_v13  ;;  %v2446_v26 = vcombine.low %v132_v12, %v136_v13  ;;  %v148_v27 = vld [vmem:[#allocation2 + $0x1d0] sm:$0xff] }
  0x5e   :  { %v2462_v42 = vcombine.low %v148_v27, %v152_v28 }
  0x5f   :  { %942 = vmatpush1.bf16.msra.mxu0 %v2506_v20  ;;  %983 = vmatpush1.bf16.msra.mxu1 %v2508_v36  ;;  %v140_v20 = vld [vmem:[#allocation2 + $0x190] sm:$0xff] }
  0x60   :  { %943 = vmatprep.subr.bf16.mxu0 %v2515_v23  ;;  %984 = vmatprep.subr.bf16.mxu1 %v2517_v37  ;;  %v133_v23 = vld [vmem:[#allocation2 + $0x158] sm:$0xff]  ;;  %v2455_v29 = vcombine.high %v140_v20, %v144_v21  ;;  %v2454_v34 = vcombine.low %v140_v20, %v144_v21  ;;  %v160_v36 = vld [vmem:[#allocation2 + $0x230] sm:$0xff]  ;;  %v2463_v37 = vcombine.high %v148_v27, %v152_v28 }
  0x61   :  { %v2448_v38 = vcombine.low %v133_v23, %v137_v24  ;;  %v2470_v52 = vcombine.low %v156_v35, %v160_v36 }
  0x63   :  { %944 = vmatpush1.bf16.msra.mxu0 %v2514_v30  ;;  %985 = vmatpush1.bf16.msra.mxu1 %v2516_v45  ;;  %v2440_v30 = vcombine.low %v125_v16, %v129_v17  ;;  %v2471_v45 = vcombine.high %v156_v35, %v160_v36  ;;  %v200_v16 = vld [vmem:[#allocation2 + $0x370] sm:$0xff] }
  0x64   :  { %945 = vmatprep.subr.bf16.mxu0 %v2523_v33  ;;  %986 = vmatprep.subr.bf16.mxu1 %v2525_v47  ;;  %v2449_v33 = vcombine.high %v133_v23, %v137_v24  ;;  %v157_v47 = vld [vmem:[#allocation2 + $0x218] sm:$0xff]  ;;  %v208_v23 = vld [vmem:[#allocation2 + $0x3b0] sm:$0xff] }
  0x67   :  { %946 = vmatpush1.bf16.msra.mxu0 %v2522_v40  ;;  %987 = vmatpush1.bf16.msra.mxu1 %v2524_v55  ;;  %v153_v40 = vld [vmem:[#allocation2 + $0x1f8] sm:$0xff]  ;;  %v172_v55 = vld [vmem:[#allocation2 + $0x290] sm:$0xff] }
  0x68   :  { %997 = vmatprep.subr.bf16.mxu0 %v2407_v43  ;;  %1038 = vmatprep.subr.bf16.mxu1 %v2409_v58  ;;  %v164_v43 = vld [vmem:[#allocation2 + $0x250] sm:$0xff]  ;;  %v2465_v48 = vcombine.high %v149_v39, %v153_v40  ;;  %v165_v58 = vld [vmem:[#allocation2 + $0x258] sm:$0xff]  ;;  %v2487_v61 = vcombine.high %v172_v55, %v176_v56  ;;  %v2486_v4 = vcombine.low %v172_v55, %v176_v56  ;;  %v2701_v55 = vld [vmem:[#allocation4 + $0x20] ss:$8 sps:$4 sm:$0xff]  }
  0x69   :  { %v2479_v53 = vcombine.high %v164_v43, %v168_v44  ;;  %v2478_v60 = vcombine.low %v164_v43, %v168_v44  ;;  %v2691_v43 = vld [vmem:[#allocation4 + $0x4] ss:$8 sps:$4 sm:$0xff]   ;;  %v2698_v56 = vld [vmem:[#allocation4 + $0x90] ss:$8 sps:$4 sm:$0xff]  }
  0x6a   :  { %948 = vmatmul.mubr.bf16.vlgmr.msra.gmra.mrb[0].mxu0 %v3006_v49  ;;  %989 = vmatmul.mubr.bf16.vlgmr.msra.gmra.mrb[0].mxu1 %v3006_v49 }
  0x6b   :  { %998 = vmatpush1.bf16.msra.mxu0 %v2406_v51  ;;  %1029 = vmatprep.mubr.bf16.mxu0 %v3001_v50  ;;  %v161_v51 = vld [vmem:[#allocation2 + $0x238] sm:$0xff] }
  0x6c   :  { %999 = vmatprep.subr.bf16.mxu0 %v2415_v54  ;;  %1039 = vmatpush1.bf16.msra.mxu1 %v2408_v63  ;;  %v2464_v54 = vcombine.low %v149_v39, %v153_v40  ;;  %v2473_v57 = vcombine.high %v157_v47, %v161_v51  ;;  %v180_v63 = vld [vmem:[#allocation2 + $0x2d0] sm:$0xff]  ;;  %v213_v39 = vld [vmem:[#allocation2 + $0x3d8] sm:$0xff] }
  0x6d   :  { %1040 = vmatprep.subr.bf16.mxu1 %v2417_v2  ;;  %1070 = vmatprep.mubr.bf16.mxu1 %v3001_v50  ;;  %v2432_v50 = vcombine.low %v117_v8, %v121_v9  ;;  %v173_v2 = vld [vmem:[#allocation2 + $0x298] sm:$0xff]  ;;  %v2495_v5 = vcombine.high %v180_v63, %v184_v0  ;;  %v192_v8 = vld [vmem:[#allocation2 + $0x330] sm:$0xff]  ;;  %v2494_v12 = vcombine.low %v180_v63, %v184_v0  ;;  %v2713_v63 = vld [vmem:[#allocation4 + $0x40] ss:$8 sps:$4 sm:$0xff]  }
  0x6e   :  { %v217_v40 = vld [vmem:[#allocation2 + $0x3f8] sm:$0xff] }
  0x6f   :  { %1000 = vmatpush1.bf16.msra.mxu0 %v2414_v59  ;;  %v169_v59 = vld [vmem:[#allocation2 + $0x278] sm:$0xff]  ;;  %v2529_v44 = vcombine.high %v213_v39, %v217_v40 }
  0x70   :  { %1001 = vmatprep.subr.bf16.mxu0 %v2423_v62  ;;  %1041 = vmatpush1.bf16.msra.mxu1 %v2416_v7  ;;  %v2472_v62 = vcombine.low %v157_v47, %v161_v51  ;;  %v2481_v1 = vcombine.high %v165_v58, %v169_v59  ;;  %v188_v7 = vld [vmem:[#allocation2 + $0x310] sm:$0xff] }
  0x71   :  { %1042 = vmatprep.subr.bf16.mxu1 %v2425_v10  ;;  %v181_v10 = vld [vmem:[#allocation2 + $0x2d8] sm:$0xff]  ;;  %v2503_v13 = vcombine.high %v188_v7, %v192_v8  ;;  %v2502_v20 = vcombine.low %v188_v7, %v192_v8 }
  0x72   :  { %v2697_v47 = vld [vmem:[#allocation4 + $0x14] ss:$8 sps:$4 sm:$0xff]   ;;  %v2695_v51 = vld [vmem:[#allocation4 + $0x10] ss:$8 sps:$4 sm:$0xff]  }
  0x73   :  { %1002 = vmatpush1.bf16.msra.mxu0 %v2422_v3  ;;  %v177_v3 = vld [vmem:[#allocation2 + $0x2b8] sm:$0xff] }
  0x74   :  { %1003 = vmatprep.subr.bf16.mxu0 %v2431_v6  ;;  %1043 = vmatpush1.bf16.msra.mxu1 %v2424_v15  ;;  %v2480_v6 = vcombine.low %v165_v58, %v169_v59  ;;  %v2489_v9 = vcombine.high %v173_v2, %v177_v3  ;;  %v196_v15 = vld [vmem:[#allocation2 + $0x350] sm:$0xff]  ;;  %v2706_v58 = vld [vmem:[#allocation4 + $0xa4] ss:$8 sps:$4 sm:$0xff]  }
  0x75   :  { %1044 = vmatprep.subr.bf16.mxu1 %v2433_v18  ;;  %v189_v18 = vld [vmem:[#allocation2 + $0x318] sm:$0xff]  ;;  %v2511_v21 = vcombine.high %v196_v15, %v200_v16  ;;  %v2510_v27 = vcombine.low %v196_v15, %v200_v16  ;;  %v2742_v16 = vld [vmem:[#allocation4 + $0x184] ss:$8 sps:$4 sm:$0xff]  }
  0x76   :  { %v2707_v59 = vld [vmem:[#allocation4 + $0x30] ss:$8 sps:$4 sm:$0xff]   ;;  %v2721_v0 = vld [vmem:[#allocation4 + $0x54] ss:$8 sps:$4 sm:$0xff]  }
  0x77   :  { %1004 = vmatpush1.bf16.msra.mxu0 %v2430_v11  ;;  %v185_v11 = vld [vmem:[#allocation2 + $0x2f8] sm:$0xff] }
  0x78   :  { %1005 = vmatprep.subr.bf16.mxu0 %v2439_v14  ;;  %1045 = vmatpush1.bf16.msra.mxu1 %v2432_v50  ;;  %v2488_v14 = vcombine.low %v173_v2, %v177_v3  ;;  %v2497_v17 = vcombine.high %v181_v10, %v185_v11  ;;  %v204_v50 = vld [vmem:[#allocation2 + $0x390] sm:$0xff]  ;;  %v2716_v3 = vld [vmem:[#allocation4 + $0xc0] ss:$8 sps:$4 sm:$0xff]  }
  0x79   :  { %1046 = vmatprep.subr.bf16.mxu1 %v2441_v25  ;;  %v197_v25 = vld [vmem:[#allocation2 + $0x358] sm:$0xff]  ;;  %v2519_v28 = vcombine.high %v204_v50, %v208_v23  ;;  %v2518_v35 = vcombine.low %v204_v50, %v208_v23 }
  0x7a   :  { %v2719_v2 = vld [vmem:[#allocation4 + $0x50] ss:$8 sps:$4 sm:$0xff]   ;;  %v2733_v8 = vld [vmem:[#allocation4 + $0x74] ss:$8 sps:$4 sm:$0xff]  }
  0x7b   :  { %1006 = vmatpush1.bf16.msra.mxu0 %v2438_v19  ;;  %v193_v19 = vld [vmem:[#allocation2 + $0x338] sm:$0xff] }
  0x7c   :  { %1007 = vmatprep.subr.bf16.mxu0 %v2447_v22  ;;  %1047 = vmatpush1.bf16.msra.mxu1 %v2440_v30  ;;  %v2496_v22 = vcombine.low %v181_v10, %v185_v11  ;;  %v2505_v24 = vcombine.high %v189_v18, %v193_v19  ;;  %v212_v30 = vld [vmem:[#allocation2 + $0x3d0] sm:$0xff]  ;;  %v2935_v10 = vmov 0  }
  0x7d   :  { %1048 = vmatprep.subr.bf16.mxu1 %v2449_v33  ;;  %v205_v33 = vld [vmem:[#allocation2 + $0x398] sm:$0xff]  ;;  %v2527_v36 = vcombine.high %v212_v30, %v216_v31 }
  0x7e   :  { %v2722_v7 = vld [vmem:[#allocation4 + $0xd0] ss:$8 sps:$4 sm:$0xff]  }
  0x7f   :  { %1008 = vmatpush1.bf16.msra.mxu0 %v2446_v26  ;;  %v201_v26 = vld [vmem:[#allocation2 + $0x378] sm:$0xff] }
  0x80   :  { %1009 = vmatprep.subr.bf16.mxu0 %v2455_v29  ;;  %1049 = vmatpush1.bf16.msra.mxu1 %v2448_v38  ;;  %v2504_v29 = vcombine.low %v189_v18, %v193_v19  ;;  %v2513_v32 = vcombine.high %v197_v25, %v201_v26  ;;  %v2731_v11 = vld [vmem:[#allocation4 + $0x70] ss:$8 sps:$4 sm:$0xff]  }
  0x81   :  { %1050 = vmatprep.subr.bf16.mxu1 %v2457_v41  ;;  %v2526_v41 = vcombine.low %v212_v30, %v216_v31  ;;  %v2734_v15 = vld [vmem:[#allocation4 + $0xf0] ss:$8 sps:$4 sm:$0xff]   ;;  %v2740_v31 = vld [vmem:[#allocation4 + $0x180] ss:$8 sps:$4 sm:$0xff]  }
  0x83   :  { %1010 = vmatpush1.bf16.msra.mxu0 %v2454_v34  ;;  %v209_v34 = vld [vmem:[#allocation2 + $0x3b8] sm:$0xff] }
  0x84   :  { %1011 = vmatprep.subr.bf16.mxu0 %v2463_v37  ;;  %1051 = vmatpush1.bf16.msra.mxu1 %v2456_v46  ;;  %v2512_v37 = vcombine.low %v197_v25, %v201_v26  ;;  %v2521_v38 = vcombine.high %v205_v33, %v209_v34  ;;  %v2528_v46 = vcombine.low %v213_v39, %v217_v40  ;;  %v2751_v39 = vld [vmem:[#allocation4 + $0x124] ss:$8 sps:$4 sm:$0xff]  }
  0x85   :  { %1052 = vmatprep.subr.bf16.mxu1 %v2465_v48  ;;  %v2694_v48 = vld [vmem:[#allocation4 + $0x84] ss:$8 sps:$4 sm:$0xff]  }
  0x87   :  { %1012 = vmatpush1.bf16.msra.mxu0 %v2462_v42  ;;  %v2520_v42 = vcombine.low %v205_v33, %v209_v34  ;;  %v2748_v34 = vld [vmem:[#allocation4 + $0x194] ss:$8 sps:$4 sm:$0xff]  }
  0x88   :  { %1013 = vmatprep.subr.bf16.mxu0 %v2471_v45  ;;  %1053 = vmatpush1.bf16.msra.mxu1 %v2464_v54  ;;  %v2689_v45 = vld [vmem:[#allocation4] ss:$8 sps:$4 sm:$0xff]   ;;  %v2700_v54 = vld [vmem:[#allocation4 + $0x94] ss:$8 sps:$4 sm:$0xff]  }
  0x89   :  { %1054 = vmatprep.subr.bf16.mxu1 %v2473_v57  ;;  %v2709_v57 = vld [vmem:[#allocation4 + $0x34] ss:$8 sps:$4 sm:$0xff]  }
  0x8b   :  { %1014 = vmatpush1.bf16.msra.mxu0 %v2470_v52  ;;  %v2692_v52 = vld [vmem:[#allocation4 + $0x80] ss:$8 sps:$4 sm:$0xff]  }
  0x8c   :  { %1015 = vmatprep.subr.bf16.mxu0 %v2479_v53  ;;  %1055 = vmatpush1.bf16.msra.mxu1 %v2472_v62  ;;  %v2703_v53 = vld [vmem:[#allocation4 + $0x24] ss:$8 sps:$4 sm:$0xff]   ;;  %v2712_v62 = vld [vmem:[#allocation4 + $0xb4] ss:$8 sps:$4 sm:$0xff]  }
  0x8d   :  { %1056 = vmatprep.subr.bf16.mxu1 %v2481_v1  ;;  %v2718_v1 = vld [vmem:[#allocation4 + $0xc4] ss:$8 sps:$4 sm:$0xff]  }
  0x8f   :  { %1016 = vmatpush1.bf16.msra.mxu0 %v2478_v60  ;;  %v2704_v60 = vld [vmem:[#allocation4 + $0xa0] ss:$8 sps:$4 sm:$0xff]  }
  0x90   :  { %1017 = vmatprep.subr.bf16.mxu0 %v2487_v61  ;;  %1057 = vmatpush1.bf16.msra.mxu1 %v2480_v6  ;;  %v2715_v61 = vld [vmem:[#allocation4 + $0x44] ss:$8 sps:$4 sm:$0xff]   ;;  %v2725_v6 = vld [vmem:[#allocation4 + $0x60] ss:$8 sps:$4 sm:$0xff]  }
  0x91   :  { %1058 = vmatprep.subr.bf16.mxu1 %v2489_v9  ;;  %v2730_v9 = vld [vmem:[#allocation4 + $0xe4] ss:$8 sps:$4 sm:$0xff]  }
  0x93   :  { %1018 = vmatpush1.bf16.msra.mxu0 %v2486_v4  ;;  %v2727_v4 = vld [vmem:[#allocation4 + $0x64] ss:$8 sps:$4 sm:$0xff]  }
  0x94   :  { %1019 = vmatprep.subr.bf16.mxu0 %v2495_v5  ;;  %1059 = vmatpush1.bf16.msra.mxu1 %v2488_v14  ;;  %v2724_v5 = vld [vmem:[#allocation4 + $0xd4] ss:$8 sps:$4 sm:$0xff]  }
  0x95   :  { %1060 = vmatprep.subr.bf16.mxu1 %v2497_v17  ;;  %v2736_v14 = vld [vmem:[#allocation4 + $0xf4] ss:$8 sps:$4 sm:$0xff]   ;;  %v220_v17 = vlaneseq }
  0x97   :  { %1020 = vmatpush1.bf16.msra.mxu0 %v2494_v12  ;;  %v2728_v12 = vld [vmem:[#allocation4 + $0xe0] ss:$8 sps:$4 sm:$0xff]   ;;  %v3016_v18 = vshrl.u32 %v220_v17, 7  ;;  %v2791_v17 = vld [vmem:[#allocation4 + $0x210] ss:$8 sps:$4 sm:$0xff]  }
  0x98   :  { %1021 = vmatprep.subr.bf16.mxu0 %v2503_v13  ;;  %1061 = vmatpush1.bf16.msra.mxu1 %v2496_v22  ;;  %v2739_v13 = vld [vmem:[#allocation4 + $0x104] ss:$8 sps:$4 sm:$0xff]  }
  0x99   :  { %1062 = vmatprep.subr.bf16.mxu1 %v2505_v24  ;;  %v3019_v19 = vsub.s32 0, %v3016_v18 }
  0x9b   :  { %1022 = vmatpush1.bf16.msra.mxu0 %v2502_v20  ;;  %v3024_v20 = vld [vmem:[%s3117_s2] sm:$0xff] }
  0x9c   :  { %1023 = vmatprep.subr.bf16.mxu0 %v2511_v21  ;;  %1063 = vmatpush1.bf16.msra.mxu1 %v2504_v29  ;;  %v3027_v21 = vsub.s32 1, %v3016_v18  ;;  %v223_v22 = vrot.slane %v3024_v20, %v3019_v19 }
  0x9d   :  { %1064 = vmatprep.subr.bf16.mxu1 %v2513_v32  ;;  %v2745_v32 = vld [vmem:[#allocation4 + $0x114] ss:$8 sps:$4 sm:$0xff]  }
  0x9e   :  { %v227_v50 = vrot.slane %v3024_v20, %v3027_v21 }
  0x9f   :  { %1024 = vmatpush1.bf16.msra.mxu0 %v2510_v27 }
  0xa0   :  { %1025 = vmatprep.subr.bf16.mxu0 %v2519_v28  ;;  %1065 = vmatpush1.bf16.msra.mxu1 %v2512_v37  ;;  %v2737_v28 = vld [vmem:[#allocation4 + $0x100] ss:$8 sps:$4 sm:$0xff]  }
  0xa1   :  { %1066 = vmatprep.subr.bf16.mxu1 %v2521_v38  ;;  %v2746_v38 = vld [vmem:[#allocation4 + $0x190] ss:$8 sps:$4 sm:$0xff]  }
  0xa3   :  { %1026 = vmatpush1.bf16.msra.mxu0 %v2518_v35 }
  0xa4   :  { %1027 = vmatprep.subr.bf16.mxu0 %v2527_v36  ;;  %1067 = vmatpush1.bf16.msra.mxu1 %v2520_v42  ;;  %v2743_v36 = vld [vmem:[#allocation4 + $0x110] ss:$8 sps:$4 sm:$0xff]  }
  0xa5   :  { %1068 = vmatprep.subr.bf16.mxu1 %v2529_v44  ;;  %v2752_v44 = vld [vmem:[#allocation4 + $0x1a0] ss:$8 sps:$4 sm:$0xff]  }
  0xa7   :  { %1028 = vmatpush1.bf16.msra.mxu0 %v2526_v41  ;;  %v2754_v41 = vld [vmem:[#allocation4 + $0x1a4] ss:$8 sps:$4 sm:$0xff]  }
  0xa8   :  { %1195 = vmatprep.subr.bf16.mxu0 %v2691_v43  ;;  %1069 = vmatpush1.bf16.msra.mxu1 %v2528_v46  ;;  %v2749_v43 = vld [vmem:[#allocation4 + $0x120] ss:$8 sps:$4 sm:$0xff]   ;;  %v2760_v46 = vld [vmem:[#allocation4 + $0x1b4] ss:$8 sps:$4 sm:$0xff]  }
  0xa9   :  { %1358 = vmatprep.subr.bf16.mxu1 %v2694_v48  ;;  %v2758_v48 = vld [vmem:[#allocation4 + $0x1b0] ss:$8 sps:$4 sm:$0xff]  }
  0xaa   :  { %1030 = vmatmul.mubr.bf16.vlgmr.msra.gmra.mrb[4].mxu0 %v3006_v49 }
  0xab   :  { %1196 = vmatpush1.bf16.msra.mxu0 %v2689_v45  ;;  %1071 = vmatmul.mubr.bf16.vlgmr.msra.gmra.mrb[4].mxu1 %v3006_v49  ;;  %v2710_v49 = vld [vmem:[#allocation4 + $0xb0] ss:$8 sps:$4 sm:$0xff]   ;;  %v2757_v45 = vld [vmem:[#allocation4 + $0x134] ss:$8 sps:$4 sm:$0xff]  }
  0xac   :  { %1197 = vmatprep.subr.bf16.mxu0 %v2697_v47  ;;  %1359 = vmatpush1.bf16.msra.mxu1 %v2692_v52  ;;  %v2755_v47 = vld [vmem:[#allocation4 + $0x130] ss:$8 sps:$4 sm:$0xff]   ;;  %v2766_v52 = vld [vmem:[#allocation4 + $0x1c4] ss:$8 sps:$4 sm:$0xff]  }
  0xad   :  { %1360 = vmatprep.subr.bf16.mxu1 %v2700_v54  ;;  %1227 = vmatprep.mubr.bf16.mxu0 %v2935_v10  ;;  %v2764_v54 = vld [vmem:[#allocation4 + $0x1c0] ss:$8 sps:$4 sm:$0xff]  }
  0xae   :  { %1390 = vmatprep.mubr.bf16.mxu1 %v2935_v10 }
  0xaf   :  { %1198 = vmatpush1.bf16.msra.mxu0 %v2695_v51  ;;  %v2763_v51 = vld [vmem:[#allocation4 + $0x144] ss:$8 sps:$4 sm:$0xff]  }
  0xb0   :  { %1199 = vmatprep.subr.bf16.mxu0 %v2703_v53  ;;  %1361 = vmatpush1.bf16.msra.mxu1 %v2698_v56  ;;  %v2761_v53 = vld [vmem:[#allocation4 + $0x140] ss:$8 sps:$4 sm:$0xff]   ;;  %v2772_v56 = vld [vmem:[#allocation4 + $0x1d4] ss:$8 sps:$4 sm:$0xff]  }
  0xb1   :  { %1362 = vmatprep.subr.bf16.mxu1 %v2706_v58  ;;  %v2767_v58 = vld [vmem:[#allocation4 + $0x150] ss:$8 sps:$4 sm:$0xff]  }
  0xb3   :  { %1200 = vmatpush1.bf16.msra.mxu0 %v2701_v55  ;;  %v2769_v55 = vld [vmem:[#allocation4 + $0x154] ss:$8 sps:$4 sm:$0xff]  }
  0xb4   :  { %1201 = vmatprep.subr.bf16.mxu0 %v2709_v57  ;;  %1363 = vmatpush1.bf16.msra.mxu1 %v2704_v60  ;;  %v230_v57 = vsub.s32 2, %v3016_v18  ;;  %v2770_v60 = vld [vmem:[#allocation4 + $0x1d0] ss:$8 sps:$4 sm:$0xff]  }
  0xb5   :  { %1364 = vmatprep.subr.bf16.mxu1 %v2712_v62  ;;  %v2778_v62 = vld [vmem:[#allocation4 + $0x1e4] ss:$8 sps:$4 sm:$0xff]  }
  0xb7   :  { %1202 = vmatpush1.bf16.msra.mxu0 %v2707_v59  ;;  %v234_v59 = vsub.s32 3, %v3016_v18 }
  0xb8   :  { %1203 = vmatprep.subr.bf16.mxu0 %v2715_v61  ;;  %1365 = vmatpush1.bf16.msra.mxu1 %v2710_v49  ;;  %v2775_v61 = vld [vmem:[#allocation4 + $0x164] ss:$8 sps:$4 sm:$0xff]   ;;  %v2773_v49 = vld [vmem:[#allocation4 + $0x160] ss:$8 sps:$4 sm:$0xff]  }
  0xb9   :  { %1366 = vmatprep.subr.bf16.mxu1 %v2718_v1  ;;  %v2776_v1 = vld [vmem:[#allocation4 + $0x1e0] ss:$8 sps:$4 sm:$0xff]  }
  0xbb   :  { %1204 = vmatpush1.bf16.msra.mxu0 %v2713_v63  ;;  %v231_v63 = vrot.slane %v3024_v20, %v230_v57 }
  0xbc   :  { %1205 = vmatprep.subr.bf16.mxu0 %v2721_v0  ;;  %1367 = vmatpush1.bf16.msra.mxu1 %v2716_v3  ;;  %v235_v0 = vrot.slane %v3024_v20, %v234_v59  ;;  %v2784_v3 = vld [vmem:[#allocation4 + $0x1f4] ss:$8 sps:$4 sm:$0xff]   ;;  %v2833_v59 = vld [vmem:[#allocation4 + $0x300] ss:$8 sps:$4 sm:$0xff]  }
  0xbd   :  { %1368 = vmatprep.subr.bf16.mxu1 %v2724_v5 }
  0xbf   :  { %1206 = vmatpush1.bf16.msra.mxu0 %v2719_v2  ;;  %v2781_v2 = vld [vmem:[#allocation4 + $0x174] ss:$8 sps:$4 sm:$0xff]  }
  0xc0   :  { %1207 = vmatprep.subr.bf16.mxu0 %v2727_v4  ;;  %1369 = vmatpush1.bf16.msra.mxu1 %v2722_v7  ;;  %v2782_v7 = vld [vmem:[#allocation4 + $0x1f0] ss:$8 sps:$4 sm:$0xff]  }
  0xc1   :  { %1370 = vmatprep.subr.bf16.mxu1 %v2730_v9  ;;  %v2790_v9 = vld [vmem:[#allocation4 + $0x284] ss:$8 sps:$4 sm:$0xff]  }
  0xc3   :  { %1208 = vmatpush1.bf16.msra.mxu0 %v2725_v6  ;;  %v2779_v6 = vld [vmem:[#allocation4 + $0x170] ss:$8 sps:$4 sm:$0xff]  }
  0xc4   :  { %1209 = vmatprep.subr.bf16.mxu0 %v2733_v8  ;;  %1371 = vmatpush1.bf16.msra.mxu1 %v2728_v12  ;;  %v2787_v8 = vld [vmem:[#allocation4 + $0x204] ss:$8 sps:$4 sm:$0xff]  }
  0xc5   :  { %1372 = vmatprep.subr.bf16.mxu1 %v2736_v14  ;;  %v2788_v14 = vld [vmem:[#allocation4 + $0x280] ss:$8 sps:$4 sm:$0xff]  }
  0xc7   :  { %1210 = vmatpush1.bf16.msra.mxu0 %v2731_v11 }
  0xc8   :  { %1522 = vmatprep.subr.bf16.mxu0 %v2739_v13  ;;  %1373 = vmatpush1.bf16.msra.mxu1 %v2734_v15  ;;  %v2785_v13 = vld [vmem:[#allocation4 + $0x200] ss:$8 sps:$4 sm:$0xff]   ;;  %v2793_v15 = vld [vmem:[#allocation4 + $0x214] ss:$8 sps:$4 sm:$0xff]  }
  0xc9   :  { %1686 = vmatprep.subr.bf16.mxu1 %v2742_v16  ;;  %v2796_v16 = vld [vmem:[#allocation4 + $0x294] ss:$8 sps:$4 sm:$0xff]  }
 0x13d   :  { %v949_v23 = vpop.f32.mrb[0].mxu0  ;;  %v990_v35 = vpop.f32.mrb[0].mxu1 }
 0x13e   :  { %v950_v24 = vadd.f32 %v949_v23, %v223_v22  ;;  %v951_v25 = vpop.f32.mrb[1].mxu0  ;;  %v992_v37 = vpop.f32.mrb[1].mxu1  ;;  %v991_v4 = vadd.f32 %v990_v35, %v231_v63  ;;  %v2794_v22 = vld [vmem:[#allocation4 + $0x290] ss:$8 sps:$4 sm:$0xff]   ;;  %v2802_v23 = vld [vmem:[#allocation4 + $0x2a4] ss:$8 sps:$4 sm:$0xff]  }
 0x13f   :  { %v952_v26 = vadd.f32 %v951_v25, %v227_v50  ;;  %v953_v27 = vpop.f32.mrb[2].mxu0  ;;  %v994_v40 = vpop.f32.mrb[2].mxu1  ;;  %v993_v5 = vadd.f32 %v992_v37, %v235_v0  ;;  %v2799_v50 = vld [vmem:[#allocation4 + $0x224] ss:$8 sps:$4 sm:$0xff]   ;;  %v2800_v25 = vld [vmem:[#allocation4 + $0x2a0] ss:$8 sps:$4 sm:$0xff]  }
 0x140   :  { %v1079_v29 = vpack.c.bf16 %v950_v24, %v950_v24  ;;  %v954_v30 = vpop.f32.mrb[3].mxu0  ;;  %v995_v42 = vpop.f32.mrb[3].mxu1  ;;  %v1081_v11 = vpack.c.bf16 %v991_v4, %v991_v4  ;;  %v2797_v24 = vld [vmem:[#allocation4 + $0x220] ss:$8 sps:$4 sm:$0xff]   ;;  %v2808_v27 = vld [vmem:[#allocation4 + $0x2b4] ss:$8 sps:$4 sm:$0xff]  }
 0x141   :  { %v1080_v33 = vpack.c.bf16 %v952_v26, %v952_v26  ;;  %v1082_v12 = vpack.c.bf16 %v993_v5, %v993_v5  ;;  %v2805_v26 = vld [vmem:[#allocation4 + $0x234] ss:$8 sps:$4 sm:$0xff]   ;;  %v2811_v30 = vld [vmem:[#allocation4 + $0x244] ss:$8 sps:$4 sm:$0xff]   ;;  %v2818_v37 = vld [vmem:[#allocation4 + $0x2d0] ss:$8 sps:$4 sm:$0xff]  }
 0x142   :  { %1228 = vmatmul.mubr.bf16.vlgmr.msra.gmra.mrb[8].mxu0 %v1079_v29  ;;  %v2806_v29 = vld [vmem:[#allocation4 + $0x2b0] ss:$8 sps:$4 sm:$0xff]   ;;  %v2820_v35 = vld [vmem:[#allocation4 + $0x2d4] ss:$8 sps:$4 sm:$0xff]   ;;  %v238_v40 = vsub.s32 4, %v3016_v18  ;;  %v242_v42 = vsub.s32 5, %v3016_v18 }
 0x143   :  { %1523 = vmatpush1.bf16.msra.mxu0 %v2737_v28  ;;  %1391 = vmatmul.mubr.bf16.vlgmr.msra.gmra.mrb[8].mxu1 %v1080_v33  ;;  %v2803_v28 = vld [vmem:[#allocation4 + $0x230] ss:$8 sps:$4 sm:$0xff]   ;;  %v2812_v33 = vld [vmem:[#allocation4 + $0x2c0] ss:$8 sps:$4 sm:$0xff]   ;;  %v2841_v63 = vld [vmem:[#allocation4 + $0x314] ss:$8 sps:$4 sm:$0xff]  }
 0x144   :  { %1687 = vmatpush1.bf16.msra.mxu1 %v2740_v31  ;;  %1524 = vmatprep.subr.bf16.mxu0 %v2745_v32  ;;  %v2814_v31 = vld [vmem:[#allocation4 + $0x2c4] ss:$8 sps:$4 sm:$0xff]   ;;  %v2809_v32 = vld [vmem:[#allocation4 + $0x240] ss:$8 sps:$4 sm:$0xff]   ;;  %v2844_v0 = vld [vmem:[#allocation4 + $0x394] ss:$8 sps:$4 sm:$0xff]  }
 0x145   :  { %1688 = vmatprep.subr.bf16.mxu1 %v2748_v34  ;;  %1554 = vmatprep.mubr.bf16.mxu0 %v2935_v10  ;;  %v2817_v34 = vld [vmem:[#allocation4 + $0x254] ss:$8 sps:$4 sm:$0xff]   ;;  %v2842_v4 = vld [vmem:[#allocation4 + $0x390] ss:$8 sps:$4 sm:$0xff]   ;;  %v2847_v5 = vld [vmem:[#allocation4 + $0x324] ss:$8 sps:$4 sm:$0xff]  }
 0x146   :  { %1718 = vmatprep.mubr.bf16.mxu1 %v2935_v10 }
 0x147   :  { %1525 = vmatpush1.bf16.msra.mxu0 %v2743_v36  ;;  %v2815_v36 = vld [vmem:[#allocation4 + $0x250] ss:$8 sps:$4 sm:$0xff]  }
 0x148   :  { %1689 = vmatpush1.bf16.msra.mxu1 %v2746_v38  ;;  %1526 = vmatprep.subr.bf16.mxu0 %v2751_v39  ;;  %v2823_v38 = vld [vmem:[#allocation4 + $0x264] ss:$8 sps:$4 sm:$0xff]  }
 0x149   :  { %1690 = vmatprep.subr.bf16.mxu1 %v2754_v41  ;;  %v2826_v39 = vld [vmem:[#allocation4 + $0x2e4] ss:$8 sps:$4 sm:$0xff]   ;;  %v2821_v41 = vld [vmem:[#allocation4 + $0x260] ss:$8 sps:$4 sm:$0xff]  }
 0x14b   :  { %1527 = vmatpush1.bf16.msra.mxu0 %v2749_v43  ;;  %v2824_v43 = vld [vmem:[#allocation4 + $0x2e0] ss:$8 sps:$4 sm:$0xff]  }
 0x14c   :  { %1691 = vmatpush1.bf16.msra.mxu1 %v2752_v44  ;;  %1528 = vmatprep.subr.bf16.mxu0 %v2757_v45  ;;  %v2829_v44 = vld [vmem:[#allocation4 + $0x274] ss:$8 sps:$4 sm:$0xff]  }
 0x14d   :  { %1692 = vmatprep.subr.bf16.mxu1 %v2760_v46  ;;  %v2832_v45 = vld [vmem:[#allocation4 + $0x2f4] ss:$8 sps:$4 sm:$0xff]   ;;  %v239_v46 = vrot.slane %v3024_v20, %v238_v40 }
 0x14f   :  { %1529 = vmatpush1.bf16.msra.mxu0 %v2755_v47  ;;  %v2827_v47 = vld [vmem:[#allocation4 + $0x270] ss:$8 sps:$4 sm:$0xff]  }
 0x150   :  { %1693 = vmatpush1.bf16.msra.mxu1 %v2758_v48  ;;  %1530 = vmatprep.subr.bf16.mxu0 %v2763_v51  ;;  %v243_v48 = vrot.slane %v3024_v20, %v242_v42  ;;  %v2830_v51 = vld [vmem:[#allocation4 + $0x2f0] ss:$8 sps:$4 sm:$0xff]  }
 0x151   :  { %1694 = vmatprep.subr.bf16.mxu1 %v2766_v52  ;;  %v2835_v52 = vld [vmem:[#allocation4 + $0x304] ss:$8 sps:$4 sm:$0xff]  }
 0x153   :  { %1531 = vmatpush1.bf16.msra.mxu0 %v2761_v53 }
 0x154   :  { %1695 = vmatpush1.bf16.msra.mxu1 %v2764_v54  ;;  %1532 = vmatprep.subr.bf16.mxu0 %v2769_v55  ;;  %v2838_v54 = vld [vmem:[#allocation4 + $0x384] ss:$8 sps:$4 sm:$0xff]  }
 0x155   :  { %1696 = vmatprep.subr.bf16.mxu1 %v2772_v56 }
 0x157   :  { %1533 = vmatpush1.bf16.msra.mxu0 %v2767_v58 }
 0x158   :  { %1697 = vmatpush1.bf16.msra.mxu1 %v2770_v60  ;;  %1534 = vmatprep.subr.bf16.mxu0 %v2775_v61 }
 0x159   :  { %1698 = vmatprep.subr.bf16.mxu1 %v2778_v62  ;;  %v2836_v62 = vld [vmem:[#allocation4 + $0x380] ss:$8 sps:$4 sm:$0xff]  }
 0x15b   :  { %1535 = vmatpush1.bf16.msra.mxu0 %v2773_v49 }
 0x15c   :  { %1699 = vmatpush1.bf16.msra.mxu1 %v2776_v1  ;;  %1536 = vmatprep.subr.bf16.mxu0 %v2781_v2  ;;  %v2839_v2 = vld [vmem:[#allocation4 + $0x310] ss:$8 sps:$4 sm:$0xff]  }
 0x15d   :  { %1700 = vmatprep.subr.bf16.mxu1 %v2784_v3 }
 0x15f   :  { %1537 = vmatpush1.bf16.msra.mxu0 %v2779_v6 }
 0x160   :  { %1701 = vmatpush1.bf16.msra.mxu1 %v2782_v7  ;;  %1850 = vmatprep.subr.bf16.mxu0 %v2787_v8  ;;  %v2850_v7 = vld [vmem:[#allocation4 + $0x3a4] ss:$8 sps:$4 sm:$0xff]  }
 0x161   :  { %2014 = vmatprep.subr.bf16.mxu1 %v2790_v9  ;;  %v2845_v9 = vld [vmem:[#allocation4 + $0x320] ss:$8 sps:$4 sm:$0xff]  }
 0x162   :  { %1555 = vmatmul.mubr.bf16.vlgmr.msra.gmra.mrb[12].mxu0 %v1081_v11  ;;  %v2848_v11 = vld [vmem:[#allocation4 + $0x3a0] ss:$8 sps:$4 sm:$0xff]  }
 0x163   :  { %1719 = vmatmul.mubr.bf16.vlgmr.msra.gmra.mrb[12].mxu1 %v1082_v12  ;;  %1851 = vmatpush1.bf16.msra.mxu0 %v2785_v13  ;;  %v2853_v12 = vld [vmem:[#allocation4 + $0x334] ss:$8 sps:$4 sm:$0xff]  }
 0x164   :  { %2015 = vmatpush1.bf16.msra.mxu1 %v2788_v14  ;;  %1852 = vmatprep.subr.bf16.mxu0 %v2793_v15  ;;  %v2856_v13 = vld [vmem:[#allocation4 + $0x3b4] ss:$8 sps:$4 sm:$0xff]   ;;  %v2851_v14 = vld [vmem:[#allocation4 + $0x330] ss:$8 sps:$4 sm:$0xff]  }
 0x165   :  { %2016 = vmatprep.subr.bf16.mxu1 %v2796_v16  ;;  %1882 = vmatprep.mubr.bf16.mxu0 %v2935_v10  ;;  %v2854_v15 = vld [vmem:[#allocation4 + $0x3b0] ss:$8 sps:$4 sm:$0xff]   ;;  %v2859_v16 = vld [vmem:[#allocation4 + $0x344] ss:$8 sps:$4 sm:$0xff]  }
 0x166   :  { %2046 = vmatprep.mubr.bf16.mxu1 %v2935_v10 }
 0x167   :  { %1853 = vmatpush1.bf16.msra.mxu0 %v2791_v17  ;;  %v2862_v17 = vld [vmem:[#allocation4 + $0x3c4] ss:$8 sps:$4 sm:$0xff]  }
 0x168   :  { %2017 = vmatpush1.bf16.msra.mxu1 %v2794_v22  ;;  %1854 = vmatprep.subr.bf16.mxu0 %v2799_v50  ;;  %v2857_v22 = vld [vmem:[#allocation4 + $0x340] ss:$8 sps:$4 sm:$0xff]   ;;  %v2865_v50 = vld [vmem:[#allocation4 + $0x354] ss:$8 sps:$4 sm:$0xff]  }
 0x169   :  { %2018 = vmatprep.subr.bf16.mxu1 %v2802_v23  ;;  %v2868_v23 = vld [vmem:[#allocation4 + $0x3d4] ss:$8 sps:$4 sm:$0xff]  }
 0x16b   :  { %1855 = vmatpush1.bf16.msra.mxu0 %v2797_v24  ;;  %v246_v24 = vsub.s32 6, %v3016_v18 }
 0x16c   :  { %2019 = vmatpush1.bf16.msra.mxu1 %v2800_v25  ;;  %1856 = vmatprep.subr.bf16.mxu0 %v2805_v26  ;;  %v2863_v25 = vld [vmem:[#allocation4 + $0x350] ss:$8 sps:$4 sm:$0xff]   ;;  %v250_v26 = vsub.s32 7, %v3016_v18 }
 0x16d   :  { %2020 = vmatprep.subr.bf16.mxu1 %v2808_v27  ;;  %v2866_v27 = vld [vmem:[#allocation4 + $0x3d0] ss:$8 sps:$4 sm:$0xff]  }
 0x16f   :  { %1857 = vmatpush1.bf16.msra.mxu0 %v2803_v28  ;;  %v2871_v28 = vld [vmem:[#allocation4 + $0x364] ss:$8 sps:$4 sm:$0xff]  }
 0x170   :  { %2021 = vmatpush1.bf16.msra.mxu1 %v2806_v29  ;;  %1858 = vmatprep.subr.bf16.mxu0 %v2811_v30  ;;  %v2874_v29 = vld [vmem:[#allocation4 + $0x3e4] ss:$8 sps:$4 sm:$0xff]   ;;  %v247_v30 = vrot.slane %v3024_v20, %v246_v24 }
 0x171   :  { %2022 = vmatprep.subr.bf16.mxu1 %v2814_v31  ;;  %v2869_v31 = vld [vmem:[#allocation4 + $0x360] ss:$8 sps:$4 sm:$0xff]  }
 0x173   :  { %1859 = vmatpush1.bf16.msra.mxu0 %v2809_v32  ;;  %v251_v32 = vrot.slane %v3024_v20, %v250_v26  ;;  %v1103_v20 = vld [vmem:[%s3119_s4] sm:$0x3] }
 0x174   :  { %2023 = vmatpush1.bf16.msra.mxu1 %v2812_v33  ;;  %1860 = vmatprep.subr.bf16.mxu0 %v2817_v34  ;;  %v2872_v33 = vld [vmem:[#allocation4 + $0x3e0] ss:$8 sps:$4 sm:$0xff]   ;;  %v2877_v34 = vld [vmem:[#allocation4 + $0x374] ss:$8 sps:$4 sm:$0xff]   ;;  %v1108_v42 = vrot.slane %v1103_v20, %v3019_v19 }
 0x175   :  { %2024 = vmatprep.subr.bf16.mxu1 %v2820_v35  ;;  %v2880_v35 = vld [vmem:[#allocation4 + $0x3f4] ss:$8 sps:$4 sm:$0xff]  }
 0x177   :  { %1861 = vmatpush1.bf16.msra.mxu0 %v2815_v36 }
 0x178   :  { %2025 = vmatpush1.bf16.msra.mxu1 %v2818_v37  ;;  %1862 = vmatprep.subr.bf16.mxu0 %v2823_v38  ;;  %v2875_v37 = vld [vmem:[#allocation4 + $0x370] ss:$8 sps:$4 sm:$0xff]  }
 0x179   :  { %2026 = vmatprep.subr.bf16.mxu1 %v2826_v39  ;;  %v2878_v38 = vld [vmem:[#allocation4 + $0x3f0] ss:$8 sps:$4 sm:$0xff]  }
 0x17b   :  { %1863 = vmatpush1.bf16.msra.mxu0 %v2821_v41  ;;  %v2547_v41 = vld [vmem:[%s3119_s4 + $0x2] sm:$0x3] }
 0x17c   :  { %2027 = vmatpush1.bf16.msra.mxu1 %v2824_v43  ;;  %1864 = vmatprep.subr.bf16.mxu0 %v2829_v44  ;;  %v1112_v43 = vrot.slane %v1103_v20, %v3027_v21  ;;  %v1271_v44 = vrot.slane %v2547_v41, %v3019_v19 }
 0x17d   :  { %v1031_v53 = vpop.f32.mrb[4].mxu0  ;;  %2028 = vmatprep.subr.bf16.mxu1 %v2832_v45  ;;  %v1275_v45 = vrot.slane %v2547_v41, %v3027_v21 }
 0x17e   :  { %v1032_v55 = vadd.f32 %v1031_v53, %v239_v46  ;;  %v1033_v56 = vpop.f32.mrb[5].mxu0  ;;  %v1072_v1 = vpop.f32.mrb[4].mxu1 }
 0x17f   :  { %v1034_v57 = vadd.f32 %v1033_v56, %v243_v48  ;;  %1865 = vmatpush1.bf16.msra.mxu0 %v2827_v47  ;;  %v1035_v58 = vpop.f32.mrb[6].mxu0  ;;  %v1074_v3 = vpop.f32.mrb[5].mxu1  ;;  %v1073_v36 = vadd.f32 %v1072_v1, %v247_v30 }
 0x180   :  { %v1083_v60 = vpack.c.bf16 %v1032_v55, %v1032_v55  ;;  %2029 = vmatpush1.bf16.msra.mxu1 %v2830_v51  ;;  %v1036_v61 = vpop.f32.mrb[7].mxu0  ;;  %2178 = vmatprep.subr.bf16.mxu0 %v2835_v52  ;;  %v1076_v6 = vpop.f32.mrb[6].mxu1  ;;  %v1075_v18 = vadd.f32 %v1074_v3, %v251_v32 }
 0x181   :  { %v1084_v49 = vpack.c.bf16 %v1034_v57, %v1034_v57  ;;  %2342 = vmatprep.subr.bf16.mxu1 %v2838_v54  ;;  %v1077_v8 = vpop.f32.mrb[7].mxu1  ;;  %v1085_v39 = vpack.c.bf16 %v1073_v36, %v1073_v36 }
 0x182   :  { %1883 = vmatmul.mubr.bf16.vlgmr.msra.gmra.mrb[16].mxu0 %v1083_v60  ;;  %v1086_v40 = vpack.c.bf16 %v1075_v18, %v1075_v18 }
 0x183   :  { %2179 = vmatpush1.bf16.msra.mxu0 %v2833_v59  ;;  %2047 = vmatmul.mubr.bf16.vlgmr.msra.gmra.mrb[16].mxu1 %v1084_v49 }
 0x184   :  { %2343 = vmatpush1.bf16.msra.mxu1 %v2836_v62  ;;  %2180 = vmatprep.subr.bf16.mxu0 %v2841_v63  ;;  %v2565_v62 = vld [vmem:[%s3119_s4 + $0x4] sm:$0x3]  ;;  %v2583_v63 = vld [vmem:[%s3119_s4 + $0x6] sm:$0x3] }
 0x185   :  { %2344 = vmatprep.subr.bf16.mxu1 %v2844_v0  ;;  %2210 = vmatprep.mubr.bf16.mxu0 %v2935_v10  ;;  %v1435_v49 = vrot.slane %v2565_v62, %v3019_v19  ;;  %v1439_v0 = vrot.slane %v2565_v62, %v3027_v21  ;;  %v1599_v1 = vrot.slane %v2583_v63, %v3019_v19 }
 0x186   :  { %2374 = vmatprep.mubr.bf16.mxu1 %v2935_v10  ;;  %v2860_v10 = vld [vmem:[#allocation4 + $0x3c0] ss:$8 sps:$4 sm:$0xff]  }
 0x187   :  { %2181 = vmatpush1.bf16.msra.mxu0 %v2839_v2  ;;  %v1603_v2 = vrot.slane %v2583_v63, %v3027_v21 }
 0x188   :  { %2345 = vmatpush1.bf16.msra.mxu1 %v2842_v4  ;;  %2182 = vmatprep.subr.bf16.mxu0 %v2847_v5 }
 0x189   :  { %2346 = vmatprep.subr.bf16.mxu1 %v2850_v7 }
 0x18b   :  { %2183 = vmatpush1.bf16.msra.mxu0 %v2845_v9 }
 0x18c   :  { %2347 = vmatpush1.bf16.msra.mxu1 %v2848_v11  ;;  %2184 = vmatprep.subr.bf16.mxu0 %v2853_v12 }
 0x18d   :  { %2348 = vmatprep.subr.bf16.mxu1 %v2856_v13 }
 0x18f   :  { %2185 = vmatpush1.bf16.msra.mxu0 %v2851_v14 }
 0x190   :  { %2349 = vmatpush1.bf16.msra.mxu1 %v2854_v15  ;;  %2186 = vmatprep.subr.bf16.mxu0 %v2859_v16 }
 0x191   :  { %2350 = vmatprep.subr.bf16.mxu1 %v2862_v17 }
 0x193   :  { %2187 = vmatpush1.bf16.msra.mxu0 %v2857_v22  ;;  %v2601_v22 = vld [vmem:[%s3119_s4 + $0x8] sm:$0x3] }
 0x194   :  { %2351 = vmatpush1.bf16.msra.mxu1 %v2860_v10  ;;  %2188 = vmatprep.subr.bf16.mxu0 %v2865_v50  ;;  %v2619_v10 = vld [vmem:[%s3119_s4 + $0xa] sm:$0x3]  ;;  %v1763_v50 = vrot.slane %v2601_v22, %v3019_v19 }
 0x195   :  { %2352 = vmatprep.subr.bf16.mxu1 %v2868_v23  ;;  %v1767_v23 = vrot.slane %v2601_v22, %v3027_v21  ;;  %v1927_v24 = vrot.slane %v2619_v10, %v3019_v19 }
 0x197   :  { %2189 = vmatpush1.bf16.msra.mxu0 %v2863_v25  ;;  %v1931_v25 = vrot.slane %v2619_v10, %v3027_v21 }
 0x198   :  { %2353 = vmatpush1.bf16.msra.mxu1 %v2866_v27  ;;  %2190 = vmatprep.subr.bf16.mxu0 %v2871_v28 }
 0x199   :  { %2354 = vmatprep.subr.bf16.mxu1 %v2874_v29 }
 0x19b   :  { %2191 = vmatpush1.bf16.msra.mxu0 %v2869_v31 }
 0x19c   :  { %2355 = vmatpush1.bf16.msra.mxu1 %v2872_v33  ;;  %2192 = vmatprep.subr.bf16.mxu0 %v2877_v34 }
 0x19d   :  { %2356 = vmatprep.subr.bf16.mxu1 %v2880_v35 }
 0x19f   :  { %2193 = vmatpush1.bf16.msra.mxu0 %v2875_v37 }
 0x1a0   :  { %2357 = vmatpush1.bf16.msra.mxu1 %v2878_v38 }
 0x1a2   :  { %2211 = vmatmul.mubr.bf16.vlgmr.msra.gmra.mrb[20].mxu0 %v1085_v39  ;;  %v2637_v39 = vld [vmem:[%s3119_s4 + $0xc] sm:$0x3] }
 0x1a3   :  { %2375 = vmatmul.mubr.bf16.vlgmr.msra.gmra.mrb[20].mxu1 %v1086_v40  ;;  %v2655_v40 = vld [vmem:[%s3119_s4 + $0xe] sm:$0x3]  ;;  %v2091_v20 = vrot.slane %v2637_v39, %v3019_v19  ;;  %v2095_v41 = vrot.slane %v2637_v39, %v3027_v21 }
 0x215   :  { %v1229_v46 = vpop.f32.mrb[8].mxu0 }
 0x216   :  { %v1230_v47 = vadd.f32 %v1229_v46, %v1108_v42  ;;  %v1231_v48 = vpop.f32.mrb[9].mxu0  ;;  %v1392_v51 = vpop.f32.mrb[8].mxu1  ;;  %v2255_v42 = vrot.slane %v2655_v40, %v3019_v19 }
 0x217   :  { %v1232_v52 = vadd.f32 %v1231_v48, %v1112_v43  ;;  %v1393_v53 = vadd.f32 %v1392_v51, %v1271_v44  ;;  %v1233_v54 = vpop.f32.mrb[10].mxu0  ;;  %v1394_v55 = vpop.f32.mrb[9].mxu1  ;;  %v2259_v43 = vrot.slane %v2655_v40, %v3027_v21 }
 0x218   :  { %v1395_v56 = vadd.f32 %v1394_v55, %v1275_v45  ;;  %v1234_v57 = vpop.f32.mrb[11].mxu0  ;;  %v1396_v58 = vpop.f32.mrb[10].mxu1 }
 0x219   :  { %v1238_v59 = vcombine.low %v1230_v47, %v1232_v52  ;;  %v1397_v60 = vpop.f32.mrb[11].mxu1 }
 0x21a   :  { %v1401_v61 = vcombine.low %v1393_v53, %v1395_v56 }
 0x21b   :  { %2546 = vst.sshfl [vmem:[%s3120_s5] sm:$0x33 pattern:$0x76325410] %v1238_v59 }
 0x21c   :  { %2673 = vst.sshfl [vmem:[%s3120_s5 + $0x4] sm:$0x33 pattern:$0x76325410] %v1401_v61 }
 0x235   :  { %v1556_v3 = vpop.f32.mrb[12].mxu0 }
 0x236   :  { %v1557_v4 = vadd.f32 %v1556_v3, %v1435_v49  ;;  %v1558_v5 = vpop.f32.mrb[13].mxu0  ;;  %v1720_v6 = vpop.f32.mrb[12].mxu1 }
 0x237   :  { %v1559_v7 = vadd.f32 %v1558_v5, %v1439_v0  ;;  %v1721_v8 = vadd.f32 %v1720_v6, %v1599_v1  ;;  %v1560_v9 = vpop.f32.mrb[14].mxu0  ;;  %v1722_v11 = vpop.f32.mrb[13].mxu1 }
 0x238   :  { %v1723_v12 = vadd.f32 %v1722_v11, %v1603_v2  ;;  %v1561_v13 = vpop.f32.mrb[15].mxu0  ;;  %v1724_v14 = vpop.f32.mrb[14].mxu1 }
 0x239   :  { %v1565_v15 = vcombine.low %v1557_v4, %v1559_v7  ;;  %v1725_v16 = vpop.f32.mrb[15].mxu1 }
 0x23a   :  { %v1729_v17 = vcombine.low %v1721_v8, %v1723_v12 }
 0x23b   :  { %2674 = vst.sshfl [vmem:[%s3120_s5 + $0x8] sm:$0x33 pattern:$0x76325410] %v1565_v15 }
 0x23c   :  { %2675 = vst.sshfl [vmem:[%s3120_s5 + $0xc] sm:$0x33 pattern:$0x76325410] %v1729_v17 }
 0x255   :  { %v1884_v26 = vpop.f32.mrb[16].mxu0 }
 0x256   :  { %v1885_v27 = vadd.f32 %v1884_v26, %v1763_v50  ;;  %v1886_v28 = vpop.f32.mrb[17].mxu0  ;;  %v2048_v29 = vpop.f32.mrb[16].mxu1 }
 0x257   :  { %v1887_v30 = vadd.f32 %v1886_v28, %v1767_v23  ;;  %v2049_v31 = vadd.f32 %v2048_v29, %v1927_v24  ;;  %v1888_v32 = vpop.f32.mrb[18].mxu0  ;;  %v2050_v33 = vpop.f32.mrb[17].mxu1 }
 0x258   :  { %v2051_v34 = vadd.f32 %v2050_v33, %v1931_v25  ;;  %v1889_v35 = vpop.f32.mrb[19].mxu0  ;;  %v2052_v36 = vpop.f32.mrb[18].mxu1 }
 0x259   :  { %v1893_v18 = vcombine.low %v1885_v27, %v1887_v30  ;;  %v2053_v37 = vpop.f32.mrb[19].mxu1 }
 0x25a   :  { %v2057_v38 = vcombine.low %v2049_v31, %v2051_v34 }
 0x25b   :  { %2676 = vst.sshfl [vmem:[%s3120_s5 + $0x10] sm:$0x33 pattern:$0x76325410] %v1893_v18 }
 0x25c   :  { %2677 = vst.sshfl [vmem:[%s3120_s5 + $0x14] sm:$0x33 pattern:$0x76325410] %v2057_v38 }
 0x275   :  { %v2212_v44 = vpop.f32.mrb[20].mxu0 }
 0x276   :  { %v2213_v45 = vadd.f32 %v2212_v44, %v2091_v20  ;;  %v2214_v46 = vpop.f32.mrb[21].mxu0  ;;  %v2376_v47 = vpop.f32.mrb[20].mxu1 }
 0x277   :  { %v2215_v48 = vadd.f32 %v2214_v46, %v2095_v41  ;;  %v2377_v51 = vadd.f32 %v2376_v47, %v2255_v42  ;;  %v2216_v52 = vpop.f32.mrb[22].mxu0  ;;  %v2378_v53 = vpop.f32.mrb[21].mxu1 }
 0x278   :  { %v2379_v54 = vadd.f32 %v2378_v53, %v2259_v43  ;;  %v2217_v55 = vpop.f32.mrb[23].mxu0  ;;  %v2380_v56 = vpop.f32.mrb[22].mxu1 }
 0x279   :  { %v2221_v57 = vcombine.low %v2213_v45, %v2215_v48  ;;  %v2381_v58 = vpop.f32.mrb[23].mxu1 }
 0x27a   :  { %v2385_v59 = vcombine.low %v2377_v51, %v2379_v54 }
 0x27b   :  { %2678 = vst.sshfl [vmem:[%s3120_s5 + $0x18] sm:$0x33 pattern:$0x76325410] %v2221_v57 }
 0x27c   :  { %2679 = vst.sshfl [vmem:[%s3120_s5 + $0x1c] sm:$0x33 pattern:$0x76325410] %v2385_v59 }
 0x27d   :  { %2400 = vsyncpa [#allocation3], 1 }
 0x27e   :  { %2401 = vsyncpa [#allocation5], 1 }

</bundles_post_ra>
